<compile_context>
chip_gen: v7x
topology: tpu7x:2x2x1
jax: 0.10.0
libtpu: 0.0.40
codegen_flags: <defaults>
</compile_context>

<pallas_src>
import functools
import math

import jax
import jax.numpy as jnp
import numpy as np
from jax.experimental import pallas as pl
from jax.experimental.pallas import tpu as pltpu

NODE_DIM = 10
EDGE_DIM = 4
OUT_DIM = 10
NUM_BASIS = 10
HIDDEN = 16
WEIGHT_NUMEL = 36
CUTOFF = 4.0

SQRT3 = math.sqrt(3.0)
PW_SCALAR = math.sqrt(1.0 / 6.0)   # path weight for 0e outputs (I0, I3)
PW_VECTOR = math.sqrt(3.0 / 6.0)   # path weight for 1o outputs (I1, I2)
HALF_PI = math.pi / 2.0

# dimenet Envelope with default exponent=5  ->  p = 6
_P = 6
_EA = -(_P + 1) * (_P + 2) / 2.0   # -28
_EB = _P * (_P + 2)                #  48
_EC = -_P * (_P + 1) / 2.0         # -21


def conv_kernel(dist_ref, x_ref, sh_ref, freq_ref, w1t_ref, b1_ref, w2t_ref, b2_ref,
                out_ref, *, harmonic_freqs):
    # Feature-major refs: features on sublanes, TE edges lane-dense.
    # dist (1,TE)  x (10,TE)  sh (4,TE)  out (10,TE)
    # freq (10,1)  w1t (16,10)  b1 (16,1)  w2t (36,16)  b2 (36,1)

    # ---- RadialNet: BesselBasisLayer -> Linear(10,16) -> SiLU -> Linear(16,36) ----
    u = dist_ref[...] * (1.0 / CUTOFF)                      # (1, TE)
    u2 = u * u
    u5 = u2 * u2 * u
    # Horner-form dimenet envelope (d=0 still yields inf/NaN like the PyTorch
    # BesselBasisLayer; garbage lanes from a ragged last block stay lane-local).
    env = jnp.where(u < 1.0, 1.0 / u + u5 * (_EA + u * (_EB + u * _EC)), 0.0)

    if harmonic_freqs:
        # One 8-row (single sublane-tile) transcendental instead of a 10-row
        # (two-tile) one: rows 0..6 = sin(f_n*u) with the *actual* freqs, row 7 =
        # cos(f_1*u) via the pi/2 phase shift.  Rows 8..10 are reconstructed with
        # the Chebyshev angle-addition recurrence, which assumes f_n = n*f_1
        # (exact for the BesselBasisLayer init f_n = n*pi).
        theta = freq_ref[0:1, :] * u                        # (1, TE)
        a7 = freq_ref[0:7, :] * u                           # (7, TE)
        sc = jnp.sin(jnp.concatenate([a7, theta + HALF_PI], axis=0))   # (8, TE)
        c2 = sc[7:8, :] + sc[7:8, :]                        # 2*cos(theta)
        s8 = c2 * sc[6:7, :] - sc[5:6, :]
        s9 = c2 * s8 - sc[6:7, :]
        s10 = c2 * s9 - s8
        sins = jnp.concatenate([sc[0:7, :], s8, s9, s10], axis=0)      # (10, TE)
    else:
        # Exact path for arbitrary (trained) Bessel frequencies.
        sins = jnp.sin(freq_ref[...] * u)                   # (10, TE)
    basis = env * sins                                      # (10, TE)

    # Matmuls stay f32 on purpose: bf16 operands would introduce ~1e-3 relative
    # error (fails the 1e-4 check) and the MXU is idle anyway.
    h = jnp.dot(w1t_ref[...], basis,
                preferred_element_type=jnp.float32) + b1_ref[...]      # (16, TE)
    h = h * jax.nn.sigmoid(h)                               # SiLU
    w = jnp.dot(w2t_ref[...], h,
                preferred_element_type=jnp.float32) + b2_ref[...]      # (36, TE)

    # ---- FullyConnectedTensorProduct (per-edge weights) ----
    x = x_ref[...]                                          # (10, TE)
    sh = sh_ref[...]                                        # (4, TE)
    e_s = sh[0:1, :]                                        # scalar SH   (1, TE)
    e_v = sh[1:4, :]                                        # vector SH   (3, TE)

    # -- scalar outputs (4x0e) --
    # I0: 0e x 0e -> 0e   (weight rows 0..15, layout [u, w_out])
    s0 = (w[0:4, :] * x[0:1, :] + w[4:8, :] * x[1:2, :]
          + w[8:12, :] * x[2:3, :] + w[12:16, :] * x[3:4, :]) * e_s
    # I3: 1o x 1o -> 0e   (weight rows 28..35); both dots from one (6,TE) product
    evv = jnp.concatenate([e_v, e_v], axis=0)               # (6, TE)
    prod = x[4:10, :] * evv                                 # (6, TE)
    dot0 = prod[0:1, :] + prod[1:2, :] + prod[2:3, :]       # (1, TE)
    dot1 = prod[3:4, :] + prod[4:5, :] + prod[5:6, :]       # (1, TE)
    s3 = w[28:32, :] * dot0 + w[32:36, :] * dot1
    out_s = PW_SCALAR * (s0 + s3 * (1.0 / SQRT3))           # (4, TE)

    # -- vector outputs (2x1o) --
    # I1: 0e x 1o -> 1o (rows 16..23, [u, w_out]); both outputs' coeffs paired
    c1 = (w[16:18, :] * x[0:1, :] + w[18:20, :] * x[1:2, :]
          + w[20:22, :] * x[2:3, :] + w[22:24, :] * x[3:4, :])         # (2, TE)
    # I2: 1o x 0e -> 1o (rows 24..27, [u, w_out])
    v0 = c1[0:1, :] * e_v + (w[24:25, :] * x[4:7, :]
                             + w[26:27, :] * x[7:10, :]) * e_s         # (3, TE)
    v1 = c1[1:2, :] * e_v + (w[25:26, :] * x[4:7, :]
                             + w[27:28, :] * x[7:10, :]) * e_s         # (3, TE)
    scale_v = PW_VECTOR / SQRT3

    # Single full-block store (rows 0..9 written once; no 7:10 tile-straddle).
    out_ref[...] = jnp.concatenate([out_s, scale_v * v0, scale_v * v1], axis=0)


def _pick_tile(E, tile_e):
    if tile_e is not None:
        assert tile_e % 128 == 0
        return int(tile_e)
    # Aim for >=4 blocks (v7x: 2 TCs via "parallel" -> >=2 blocks per core) but
    # cap the tile so double-buffered I/O + temporaries stay comfortably inside
    # v5e's 16 MiB default scoped VMEM.  Per-128-edge cost is tiny, so tiles in
    # the 4K-8K range already amortize the ~0.35us per-grid-step overhead.
    t = -(-E // 4)
    t = -(-t // 128) * 128
    return int(max(128, min(t, 8192)))


def convolution_forward(x, rel_pos_sh, distance, params, *, tile_e=None,
                        assume_harmonic_freqs=True, feature_major_io=False):
    """SE(3)-equivariant convolution forward.

    Default layout matches the PyTorch module: x [E,10], rel_pos_sh [E,4],
    distance [E,1] -> [E,10].  If the surrounding pipeline already keeps edge
    tensors feature-major, pass feature_major_io=True with x [10,E],
    rel_pos_sh [4,E], distance [1,E]; the result is returned as [10,E] and the
    wrapper-side transpose HBM passes disappear entirely.
    Set assume_harmonic_freqs=False if the Bessel frequencies have been trained
    away from their n*pi initialization (exact jnp.sin path).
    """
    freq, w1, b1, w2, b2 = params

    if feature_major_io:
        d_t, x_t, sh_t = distance, x, rel_pos_sh
    else:
        # Layout plumbing only needed for the edge-major (module-spec) interface.
        d_t, x_t, sh_t = distance.T, x.T, rel_pos_sh.T
    E = x_t.shape[1]

    tile = _pick_tile(E, tile_e)
    num_blocks = pl.cdiv(E, tile)          # ragged last block handled by Pallas

    freq_c = freq.reshape(NUM_BASIS, 1)
    w1_t = w1.T                            # (HIDDEN, NUM_BASIS)
    b1_c = b1.reshape(HIDDEN, 1)
    w2_t = w2.T                            # (WEIGHT_NUMEL, HIDDEN)
    b2_c = b2.reshape(WEIGHT_NUMEL, 1)

    edge_spec = lambda dim: pl.BlockSpec((dim, tile), lambda i: (0, i))
    # Constant block index across the grid -> params stay resident in VMEM.
    param_spec = lambda shape: pl.BlockSpec(shape, lambda i: (0, 0))

    # Only very large user-selected tiles need a raised scoped-VMEM limit.
    vmem_limit = None
    if tile > 8192:
        vmem_limit = int(min(100 * 2**20, 4 * tile * 400))

    kernel = functools.partial(conv_kernel, harmonic_freqs=assume_harmonic_freqs)

    out_t = pl.pallas_call(
        kernel,
        out_shape=jax.ShapeDtypeStruct((OUT_DIM, E), jnp.float32),
        grid_spec=pltpu.PrefetchScalarGridSpec(
            num_scalar_prefetch=0,
            grid=(num_blocks,),
            in_specs=[
                edge_spec(1),                          # distance    [1, E]
                edge_spec(NODE_DIM),                   # node feats  [10, E]
                edge_spec(EDGE_DIM),                   # sph. harm.  [4, E]
                param_spec((NUM_BASIS, 1)),            # bessel freqs
                param_spec((HIDDEN, NUM_BASIS)),       # lin1 W^T
                param_spec((HIDDEN, 1)),               # lin1 b
                param_spec((WEIGHT_NUMEL, HIDDEN)),    # lin2 W^T
                param_spec((WEIGHT_NUMEL, 1)),         # lin2 b
            ],
            out_specs=edge_spec(OUT_DIM),
        ),
        compiler_params=pltpu.CompilerParams(
            dimension_semantics=("parallel",),
            vmem_limit_bytes=vmem_limit),
    )(d_t, x_t, sh_t, freq_c, w1_t, b1_c, w2_t, b2_c)

    return out_t if feature_major_io else out_t.T


def reference_forward(x, rel_pos_sh, distance, params):
    """Pure-JAX reference mirroring the PyTorch semantics (for validation)."""
    freq, w1, b1, w2, b2 = params
    u = distance / CUTOFF
    env = (1.0 / u + _EA * u**5 + _EB * u**6 + _EC * u**7) * (u < 1.0)
    basis = env * jnp.sin(freq * u)
    h = jax.nn.silu(basis @ w1 + b1)
    w = h @ w2 + b2

    x_s = x[:, :4]
    x_v = x[:, 4:].reshape(-1, 2, 3)
    e_s = rel_pos_sh[:, 0:1]
    e_v = rel_pos_sh[:, 1:4]

    W0 = w[:, 0:16].reshape(-1, 4, 4)
    W1 = w[:, 16:24].reshape(-1, 4, 2)
    W2 = w[:, 24:28].reshape(-1, 2, 2)
    W3 = w[:, 28:36].reshape(-1, 2, 4)

    s0 = jnp.einsum('euw,eu->ew', W0, x_s) * e_s
    dots = jnp.einsum('eum,em->eu', x_v, e_v)
    s3 = jnp.einsum('euw,eu->ew', W3, dots) / SQRT3
    out_s = PW_SCALAR * (s0 + s3)

    v1 = jnp.einsum('euw,eu->ew', W1, x_s)[:, :, None] * e_v[:, None, :]
    v2 = jnp.einsum('euw,eum->ewm', W2, x_v) * e_s[:, :, None]
    out_v = (PW_VECTOR / SQRT3) * (v1 + v2)
    return jnp.concatenate([out_s, out_v.reshape(-1, 6)], axis=1)


if __name__ == "__main__":
    E = 3000  # non-multiple of the tile -> exercises the ragged last block

    key = jax.random.PRNGKey(0)
    k_x, k_sh, k_d, k_w1, k_b1, k_w2, k_b2 = jax.random.split(key, 7)

    x = jax.random.normal(k_x, (E, NODE_DIM), dtype=jnp.float32)
    rel_pos_sh = jax.random.normal(k_sh, (E, EDGE_DIM), dtype=jnp.float32)
    distance = jax.random.uniform(k_d, (E, 1), minval=0.5, maxval=3.5,
                                  dtype=jnp.float32)

    # deterministic parameter init (shapes from RadialNet(tp.weight_numel=36));
    # freq matches the BesselBasisLayer init f_n = n*pi.
    freq = (jnp.arange(1, NUM_BASIS + 1, dtype=jnp.float32) * jnp.pi).reshape(1, NUM_BASIS)
    w1 = jax.random.normal(k_w1, (NUM_BASIS, HIDDEN), dtype=jnp.float32) * 0.3
    b1 = jax.random.normal(k_b1, (1, HIDDEN), dtype=jnp.float32) * 0.1
    w2 = jax.random.normal(k_w2, (HIDDEN, WEIGHT_NUMEL), dtype=jnp.float32) * 0.2
    b2 = jax.random.normal(k_b2, (1, WEIGHT_NUMEL), dtype=jnp.float32) * 0.1
    params = (freq, w1, b1, w2, b2)

    ref = jax.block_until_ready(reference_forward(x, rel_pos_sh, distance, params))

    # Default path: module-spec edge-major I/O, adaptive tile, fast sine front-end.
    out = convolution_forward(x, rel_pos_sh, distance, params)
    out = jax.block_until_ready(out)
    np.testing.assert_allclose(np.asarray(out), np.asarray(ref), rtol=1e-4, atol=1e-4)

    # Feature-major I/O path (no wrapper transposes) + exact-sin fallback.
    out_fm = convolution_forward(x.T, rel_pos_sh.T, distance.T, params,
                                 assume_harmonic_freqs=False, feature_major_io=True)
    out_fm = jax.block_until_ready(out_fm)
    np.testing.assert_allclose(np.asarray(out_fm.T), np.asarray(ref),
                               rtol=1e-4, atol=1e-4)

    print("KERNEL_OK")
</pallas_src>

<mosaic_0001>
module attributes {stable_mosaic.version = 11 : i64} {
  func.func @conv_kernel(%arg0: i32, %arg1: memref<1x768xf32, #tpu.memory_space<vmem>>, %arg2: memref<10x768xf32, #tpu.memory_space<vmem>>, %arg3: memref<4x768xf32, #tpu.memory_space<vmem>>, %arg4: memref<10x1xf32, #tpu.memory_space<vmem>>, %arg5: memref<16x10xf32, #tpu.memory_space<vmem>>, %arg6: memref<16x1xf32, #tpu.memory_space<vmem>>, %arg7: memref<36x16xf32, #tpu.memory_space<vmem>>, %arg8: memref<36x1xf32, #tpu.memory_space<vmem>>, %arg9: memref<10x768xf32, #tpu.memory_space<vmem>>) attributes {dimension_semantics = [#tpu.dimension_semantics<parallel>], iteration_bounds = array<i64: 4>, scalar_prefetch = 0 : i64, scratch_operands = 0 : i64, tpu.core_type = #tpu.core_type<tc>, window_params = [{transform_indices = @transform_0, window_bounds = array<i64: 1, 768>}, {transform_indices = @transform_1, window_bounds = array<i64: 10, 768>}, {transform_indices = @transform_2, window_bounds = array<i64: 4, 768>}, {pipeline_mode = #tpu.pipeline_mode<synchronous>, transform_indices = @transform_3, window_bounds = array<i64: 10, 1>}, {pipeline_mode = #tpu.pipeline_mode<synchronous>, transform_indices = @transform_4, window_bounds = array<i64: 16, 10>}, {pipeline_mode = #tpu.pipeline_mode<synchronous>, transform_indices = @transform_5, window_bounds = array<i64: 16, 1>}, {pipeline_mode = #tpu.pipeline_mode<synchronous>, transform_indices = @transform_6, window_bounds = array<i64: 36, 16>}, {pipeline_mode = #tpu.pipeline_mode<synchronous>, transform_indices = @transform_7, window_bounds = array<i64: 36, 1>}, {transform_indices = @transform_8, window_bounds = array<i64: 10, 768>}]} {
    %c0 = arith.constant 0 : index
    %c0_0 = arith.constant 0 : index
    %0 = vector.load %arg1[%c0, %c0_0] : memref<1x768xf32, #tpu.memory_space<vmem>>, vector<1x768xf32>
    %cst = arith.constant 2.500000e-01 : f32
    %1 = vector.broadcast %cst : f32 to vector<1x768xf32>
    %2 = arith.mulf %0, %1 : vector<1x768xf32>
    %3 = arith.mulf %2, %2 : vector<1x768xf32>
    %4 = arith.mulf %3, %3 : vector<1x768xf32>
    %5 = arith.mulf %4, %2 : vector<1x768xf32>
    %cst_1 = arith.constant 1.000000e+00 : f32
    %6 = vector.broadcast %cst_1 : f32 to vector<1x768xf32>
    %7 = arith.cmpf olt, %2, %6 : vector<1x768xf32>
    %cst_2 = arith.constant 1.000000e+00 : f32
    %8 = vector.broadcast %cst_2 : f32 to vector<1x768xf32>
    %9 = arith.divf %8, %2 : vector<1x768xf32>
    %cst_3 = arith.constant -2.100000e+01 : f32
    %10 = vector.broadcast %cst_3 : f32 to vector<1x768xf32>
    %11 = arith.mulf %2, %10 : vector<1x768xf32>
    %cst_4 = arith.constant 4.800000e+01 : f32
    %12 = vector.broadcast %cst_4 : f32 to vector<1x768xf32>
    %13 = arith.addf %12, %11 : vector<1x768xf32>
    %14 = arith.mulf %2, %13 : vector<1x768xf32>
    %cst_5 = arith.constant -2.800000e+01 : f32
    %15 = vector.broadcast %cst_5 : f32 to vector<1x768xf32>
    %16 = arith.addf %15, %14 : vector<1x768xf32>
    %17 = arith.mulf %5, %16 : vector<1x768xf32>
    %18 = arith.addf %9, %17 : vector<1x768xf32>
    %cst_6 = arith.constant 0.000000e+00 : f32
    %19 = vector.broadcast %cst_6 : f32 to vector<1x768xf32>
    %20 = arith.select %7, %18, %19 : vector<1x768xi1>, vector<1x768xf32>
    %c0_7 = arith.constant 0 : index
    %c0_8 = arith.constant 0 : index
    %21 = vector.load %arg4[%c0_7, %c0_8] : memref<10x1xf32, #tpu.memory_space<vmem>>, vector<1x1xf32>
    %22 = vector.broadcast %21 : vector<1x1xf32> to vector<1x768xf32>
    %23 = arith.mulf %22, %2 : vector<1x768xf32>
    %c0_9 = arith.constant 0 : index
    %c0_10 = arith.constant 0 : index
    %24 = vector.load %arg4[%c0_9, %c0_10] : memref<10x1xf32, #tpu.memory_space<vmem>>, vector<7x1xf32>
    %25 = vector.broadcast %24 : vector<7x1xf32> to vector<7x768xf32>
    %26 = vector.broadcast %2 : vector<1x768xf32> to vector<7x768xf32>
    %27 = arith.mulf %25, %26 : vector<7x768xf32>
    %cst_11 = arith.constant 1.57079637 : f32
    %28 = vector.broadcast %cst_11 : f32 to vector<1x768xf32>
    %29 = arith.addf %23, %28 : vector<1x768xf32>
    %30 = tpu.concatenate %27, %29 in 0 : vector<7x768xf32>, vector<1x768xf32> -> vector<8x768xf32>
    %31 = math.sin %30 : vector<8x768xf32>
    %32 = vector.extract_strided_slice %31 {offsets = [7, 0], sizes = [1, 768], strides = [1, 1]} : vector<8x768xf32> to vector<1x768xf32>
    %33 = vector.extract_strided_slice %31 {offsets = [7, 0], sizes = [1, 768], strides = [1, 1]} : vector<8x768xf32> to vector<1x768xf32>
    %34 = arith.addf %32, %33 : vector<1x768xf32>
    %35 = vector.extract_strided_slice %31 {offsets = [6, 0], sizes = [1, 768], strides = [1, 1]} : vector<8x768xf32> to vector<1x768xf32>
    %36 = arith.mulf %34, %35 : vector<1x768xf32>
    %37 = vector.extract_strided_slice %31 {offsets = [5, 0], sizes = [1, 768], strides = [1, 1]} : vector<8x768xf32> to vector<1x768xf32>
    %38 = arith.subf %36, %37 : vector<1x768xf32>
    %39 = arith.mulf %34, %38 : vector<1x768xf32>
    %40 = vector.extract_strided_slice %31 {offsets = [6, 0], sizes = [1, 768], strides = [1, 1]} : vector<8x768xf32> to vector<1x768xf32>
    %41 = arith.subf %39, %40 : vector<1x768xf32>
    %42 = arith.mulf %34, %41 : vector<1x768xf32>
    %43 = arith.subf %42, %38 : vector<1x768xf32>
    %44 = vector.extract_strided_slice %31 {offsets = [0, 0], sizes = [7, 768], strides = [1, 1]} : vector<8x768xf32> to vector<7x768xf32>
    %45 = tpu.concatenate %44, %38, %41, %43 in 0 : vector<7x768xf32>, vector<1x768xf32>, vector<1x768xf32>, vector<1x768xf32> -> vector<10x768xf32>
    %46 = vector.broadcast %20 : vector<1x768xf32> to vector<10x768xf32>
    %47 = arith.mulf %46, %45 : vector<10x768xf32>
    %c0_12 = arith.constant 0 : index
    %c0_13 = arith.constant 0 : index
    %48 = vector.load %arg5[%c0_12, %c0_13] : memref<16x10xf32, #tpu.memory_space<vmem>>, vector<16x10xf32>
    %cst_14 = arith.constant dense<0.000000e+00> : vector<16x768xf32>
    %49 = tpu.matmul %48, %47, %cst_14 {dimension_numbers = #tpu.dot_dimension_numbers<[1], [0], [0], [1], [0, 0, 1, 1], [], []>} : vector<16x10xf32>, vector<10x768xf32>, vector<16x768xf32> -> vector<16x768xf32>
    %c0_15 = arith.constant 0 : index
    %c0_16 = arith.constant 0 : index
    %50 = vector.load %arg6[%c0_15, %c0_16] : memref<16x1xf32, #tpu.memory_space<vmem>>, vector<16x1xf32>
    %51 = vector.broadcast %50 : vector<16x1xf32> to vector<16x768xf32>
    %52 = arith.addf %49, %51 : vector<16x768xf32>
    %53 = arith.negf %52 : vector<16x768xf32>
    %54 = math.exp %53 : vector<16x768xf32>
    %cst_17 = arith.constant 1.000000e+00 : f32
    %55 = vector.broadcast %cst_17 : f32 to vector<16x768xf32>
    %56 = arith.addf %55, %54 : vector<16x768xf32>
    %57 = arith.divf %55, %56 : vector<16x768xf32>
    %58 = arith.mulf %52, %57 : vector<16x768xf32>
    %c0_18 = arith.constant 0 : index
    %c0_19 = arith.constant 0 : index
    %59 = vector.load %arg7[%c0_18, %c0_19] : memref<36x16xf32, #tpu.memory_space<vmem>>, vector<36x16xf32>
    %cst_20 = arith.constant dense<0.000000e+00> : vector<36x768xf32>
    %60 = tpu.matmul %59, %58, %cst_20 {dimension_numbers = #tpu.dot_dimension_numbers<[1], [0], [0], [1], [0, 0, 1, 1], [], []>} : vector<36x16xf32>, vector<16x768xf32>, vector<36x768xf32> -> vector<36x768xf32>
    %c0_21 = arith.constant 0 : index
    %c0_22 = arith.constant 0 : index
    %61 = vector.load %arg8[%c0_21, %c0_22] : memref<36x1xf32, #tpu.memory_space<vmem>>, vector<36x1xf32>
    %62 = vector.broadcast %61 : vector<36x1xf32> to vector<36x768xf32>
    %63 = arith.addf %60, %62 : vector<36x768xf32>
    %c0_23 = arith.constant 0 : index
    %c0_24 = arith.constant 0 : index
    %64 = vector.load %arg2[%c0_23, %c0_24] : memref<10x768xf32, #tpu.memory_space<vmem>>, vector<10x768xf32>
    %c0_25 = arith.constant 0 : index
    %c0_26 = arith.constant 0 : index
    %65 = vector.load %arg3[%c0_25, %c0_26] : memref<4x768xf32, #tpu.memory_space<vmem>>, vector<4x768xf32>
    %66 = vector.extract_strided_slice %65 {offsets = [0, 0], sizes = [1, 768], strides = [1, 1]} : vector<4x768xf32> to vector<1x768xf32>
    %67 = vector.extract_strided_slice %65 {offsets = [1, 0], sizes = [3, 768], strides = [1, 1]} : vector<4x768xf32> to vector<3x768xf32>
    %68 = vector.extract_strided_slice %63 {offsets = [0, 0], sizes = [4, 768], strides = [1, 1]} : vector<36x768xf32> to vector<4x768xf32>
    %69 = vector.extract_strided_slice %64 {offsets = [0, 0], sizes = [1, 768], strides = [1, 1]} : vector<10x768xf32> to vector<1x768xf32>
    %70 = vector.broadcast %69 : vector<1x768xf32> to vector<4x768xf32>
    %71 = arith.mulf %68, %70 : vector<4x768xf32>
    %72 = vector.extract_strided_slice %63 {offsets = [4, 0], sizes = [4, 768], strides = [1, 1]} : vector<36x768xf32> to vector<4x768xf32>
    %73 = vector.extract_strided_slice %64 {offsets = [1, 0], sizes = [1, 768], strides = [1, 1]} : vector<10x768xf32> to vector<1x768xf32>
    %74 = vector.broadcast %73 : vector<1x768xf32> to vector<4x768xf32>
    %75 = arith.mulf %72, %74 : vector<4x768xf32>
    %76 = arith.addf %71, %75 : vector<4x768xf32>
    %77 = vector.extract_strided_slice %63 {offsets = [8, 0], sizes = [4, 768], strides = [1, 1]} : vector<36x768xf32> to vector<4x768xf32>
    %78 = vector.extract_strided_slice %64 {offsets = [2, 0], sizes = [1, 768], strides = [1, 1]} : vector<10x768xf32> to vector<1x768xf32>
    %79 = vector.broadcast %78 : vector<1x768xf32> to vector<4x768xf32>
    %80 = arith.mulf %77, %79 : vector<4x768xf32>
    %81 = arith.addf %76, %80 : vector<4x768xf32>
    %82 = vector.extract_strided_slice %63 {offsets = [12, 0], sizes = [4, 768], strides = [1, 1]} : vector<36x768xf32> to vector<4x768xf32>
    %83 = vector.extract_strided_slice %64 {offsets = [3, 0], sizes = [1, 768], strides = [1, 1]} : vector<10x768xf32> to vector<1x768xf32>
    %84 = vector.broadcast %83 : vector<1x768xf32> to vector<4x768xf32>
    %85 = arith.mulf %82, %84 : vector<4x768xf32>
    %86 = arith.addf %81, %85 : vector<4x768xf32>
    %87 = vector.broadcast %66 : vector<1x768xf32> to vector<4x768xf32>
    %88 = arith.mulf %86, %87 : vector<4x768xf32>
    %89 = tpu.concatenate %67, %67 in 0 : vector<3x768xf32>, vector<3x768xf32> -> vector<6x768xf32>
    %90 = vector.extract_strided_slice %64 {offsets = [4, 0], sizes = [6, 768], strides = [1, 1]} : vector<10x768xf32> to vector<6x768xf32>
    %91 = arith.mulf %90, %89 : vector<6x768xf32>
    %92 = vector.extract_strided_slice %91 {offsets = [0, 0], sizes = [1, 768], strides = [1, 1]} : vector<6x768xf32> to vector<1x768xf32>
    %93 = vector.extract_strided_slice %91 {offsets = [1, 0], sizes = [1, 768], strides = [1, 1]} : vector<6x768xf32> to vector<1x768xf32>
    %94 = arith.addf %92, %93 : vector<1x768xf32>
    %95 = vector.extract_strided_slice %91 {offsets = [2, 0], sizes = [1, 768], strides = [1, 1]} : vector<6x768xf32> to vector<1x768xf32>
    %96 = arith.addf %94, %95 : vector<1x768xf32>
    %97 = vector.extract_strided_slice %91 {offsets = [3, 0], sizes = [1, 768], strides = [1, 1]} : vector<6x768xf32> to vector<1x768xf32>
    %98 = vector.extract_strided_slice %91 {offsets = [4, 0], sizes = [1, 768], strides = [1, 1]} : vector<6x768xf32> to vector<1x768xf32>
    %99 = arith.addf %97, %98 : vector<1x768xf32>
    %100 = vector.extract_strided_slice %91 {offsets = [5, 0], sizes = [1, 768], strides = [1, 1]} : vector<6x768xf32> to vector<1x768xf32>
    %101 = arith.addf %99, %100 : vector<1x768xf32>
    %102 = vector.extract_strided_slice %63 {offsets = [28, 0], sizes = [4, 768], strides = [1, 1]} : vector<36x768xf32> to vector<4x768xf32>
    %103 = vector.broadcast %96 : vector<1x768xf32> to vector<4x768xf32>
    %104 = arith.mulf %102, %103 : vector<4x768xf32>
    %105 = vector.extract_strided_slice %63 {offsets = [32, 0], sizes = [4, 768], strides = [1, 1]} : vector<36x768xf32> to vector<4x768xf32>
    %106 = vector.broadcast %101 : vector<1x768xf32> to vector<4x768xf32>
    %107 = arith.mulf %105, %106 : vector<4x768xf32>
    %108 = arith.addf %104, %107 : vector<4x768xf32>
    %cst_27 = arith.constant 0.577350259 : f32
    %109 = vector.broadcast %cst_27 : f32 to vector<4x768xf32>
    %110 = arith.mulf %108, %109 : vector<4x768xf32>
    %111 = arith.addf %88, %110 : vector<4x768xf32>
    %cst_28 = arith.constant 0.408248305 : f32
    %112 = vector.broadcast %cst_28 : f32 to vector<4x768xf32>
    %113 = arith.mulf %112, %111 : vector<4x768xf32>
    %114 = vector.extract_strided_slice %63 {offsets = [16, 0], sizes = [2, 768], strides = [1, 1]} : vector<36x768xf32> to vector<2x768xf32>
    %115 = vector.extract_strided_slice %64 {offsets = [0, 0], sizes = [1, 768], strides = [1, 1]} : vector<10x768xf32> to vector<1x768xf32>
    %116 = vector.broadcast %115 : vector<1x768xf32> to vector<2x768xf32>
    %117 = arith.mulf %114, %116 : vector<2x768xf32>
    %118 = vector.extract_strided_slice %63 {offsets = [18, 0], sizes = [2, 768], strides = [1, 1]} : vector<36x768xf32> to vector<2x768xf32>
    %119 = vector.extract_strided_slice %64 {offsets = [1, 0], sizes = [1, 768], strides = [1, 1]} : vector<10x768xf32> to vector<1x768xf32>
    %120 = vector.broadcast %119 : vector<1x768xf32> to vector<2x768xf32>
    %121 = arith.mulf %118, %120 : vector<2x768xf32>
    %122 = arith.addf %117, %121 : vector<2x768xf32>
    %123 = vector.extract_strided_slice %63 {offsets = [20, 0], sizes = [2, 768], strides = [1, 1]} : vector<36x768xf32> to vector<2x768xf32>
    %124 = vector.extract_strided_slice %64 {offsets = [2, 0], sizes = [1, 768], strides = [1, 1]} : vector<10x768xf32> to vector<1x768xf32>
    %125 = vector.broadcast %124 : vector<1x768xf32> to vector<2x768xf32>
    %126 = arith.mulf %123, %125 : vector<2x768xf32>
    %127 = arith.addf %122, %126 : vector<2x768xf32>
    %128 = vector.extract_strided_slice %63 {offsets = [22, 0], sizes = [2, 768], strides = [1, 1]} : vector<36x768xf32> to vector<2x768xf32>
    %129 = vector.extract_strided_slice %64 {offsets = [3, 0], sizes = [1, 768], strides = [1, 1]} : vector<10x768xf32> to vector<1x768xf32>
    %130 = vector.broadcast %129 : vector<1x768xf32> to vector<2x768xf32>
    %131 = arith.mulf %128, %130 : vector<2x768xf32>
    %132 = arith.addf %127, %131 : vector<2x768xf32>
    %133 = vector.extract_strided_slice %132 {offsets = [0, 0], sizes = [1, 768], strides = [1, 1]} : vector<2x768xf32> to vector<1x768xf32>
    %134 = vector.broadcast %133 : vector<1x768xf32> to vector<3x768xf32>
    %135 = arith.mulf %134, %67 : vector<3x768xf32>
    %136 = vector.extract_strided_slice %63 {offsets = [24, 0], sizes = [1, 768], strides = [1, 1]} : vector<36x768xf32> to vector<1x768xf32>
    %137 = vector.extract_strided_slice %64 {offsets = [4, 0], sizes = [3, 768], strides = [1, 1]} : vector<10x768xf32> to vector<3x768xf32>
    %138 = vector.broadcast %136 : vector<1x768xf32> to vector<3x768xf32>
    %139 = arith.mulf %138, %137 : vector<3x768xf32>
    %140 = vector.extract_strided_slice %63 {offsets = [26, 0], sizes = [1, 768], strides = [1, 1]} : vector<36x768xf32> to vector<1x768xf32>
    %141 = vector.extract_strided_slice %64 {offsets = [7, 0], sizes = [3, 768], strides = [1, 1]} : vector<10x768xf32> to vector<3x768xf32>
    %142 = vector.broadcast %140 : vector<1x768xf32> to vector<3x768xf32>
    %143 = arith.mulf %142, %141 : vector<3x768xf32>
    %144 = arith.addf %139, %143 : vector<3x768xf32>
    %145 = vector.broadcast %66 : vector<1x768xf32> to vector<3x768xf32>
    %146 = arith.mulf %144, %145 : vector<3x768xf32>
    %147 = arith.addf %135, %146 : vector<3x768xf32>
    %148 = vector.extract_strided_slice %132 {offsets = [1, 0], sizes = [1, 768], strides = [1, 1]} : vector<2x768xf32> to vector<1x768xf32>
    %149 = vector.broadcast %148 : vector<1x768xf32> to vector<3x768xf32>
    %150 = arith.mulf %149, %67 : vector<3x768xf32>
    %151 = vector.extract_strided_slice %63 {offsets = [25, 0], sizes = [1, 768], strides = [1, 1]} : vector<36x768xf32> to vector<1x768xf32>
    %152 = vector.extract_strided_slice %64 {offsets = [4, 0], sizes = [3, 768], strides = [1, 1]} : vector<10x768xf32> to vector<3x768xf32>
    %153 = vector.broadcast %151 : vector<1x768xf32> to vector<3x768xf32>
    %154 = arith.mulf %153, %152 : vector<3x768xf32>
    %155 = vector.extract_strided_slice %63 {offsets = [27, 0], sizes = [1, 768], strides = [1, 1]} : vector<36x768xf32> to vector<1x768xf32>
    %156 = vector.extract_strided_slice %64 {offsets = [7, 0], sizes = [3, 768], strides = [1, 1]} : vector<10x768xf32> to vector<3x768xf32>
    %157 = vector.broadcast %155 : vector<1x768xf32> to vector<3x768xf32>
    %158 = arith.mulf %157, %156 : vector<3x768xf32>
    %159 = arith.addf %154, %158 : vector<3x768xf32>
    %160 = vector.broadcast %66 : vector<1x768xf32> to vector<3x768xf32>
    %161 = arith.mulf %159, %160 : vector<3x768xf32>
    %162 = arith.addf %150, %161 : vector<3x768xf32>
    %cst_29 = arith.constant 0.408248305 : f32
    %163 = vector.broadcast %cst_29 : f32 to vector<3x768xf32>
    %164 = arith.mulf %163, %147 : vector<3x768xf32>
    %cst_30 = arith.constant 0.408248305 : f32
    %165 = vector.broadcast %cst_30 : f32 to vector<3x768xf32>
    %166 = arith.mulf %165, %162 : vector<3x768xf32>
    %167 = tpu.concatenate %113, %164, %166 in 0 : vector<4x768xf32>, vector<3x768xf32>, vector<3x768xf32> -> vector<10x768xf32>
    %c0_31 = arith.constant 0 : index
    %c0_32 = arith.constant 0 : index
    %168 = vector.load %arg9[%c0_31, %c0_32] : memref<10x768xf32, #tpu.memory_space<vmem>>, vector<10x768xf32>
    tpu.vector_store %arg9[%c0_31, %c0_32], %167 {strides = array<i32>} : memref<10x768xf32, #tpu.memory_space<vmem>>, vector<10x768xf32>,
    return
  }
  func.func @transform_0(%arg0: i32) -> (i32, i32) {
    %c0_i32 = arith.constant 0 : i32
    %c0_i32_0 = arith.constant 0 : i32
    return %c0_i32, %arg0 : i32, i32
  }
  func.func @transform_1(%arg0: i32) -> (i32, i32) {
    %c0_i32 = arith.constant 0 : i32
    %c0_i32_0 = arith.constant 0 : i32
    return %c0_i32, %arg0 : i32, i32
  }
  func.func @transform_2(%arg0: i32) -> (i32, i32) {
    %c0_i32 = arith.constant 0 : i32
    %c0_i32_0 = arith.constant 0 : i32
    return %c0_i32, %arg0 : i32, i32
  }
  func.func @transform_3(%arg0: i32) -> (i32, i32) {
    %c0_i32 = arith.constant 0 : i32
    %c0_i32_0 = arith.constant 0 : i32
    %c0_i32_1 = arith.constant 0 : i32
    return %c0_i32, %c0_i32_0 : i32, i32
  }
  func.func @transform_4(%arg0: i32) -> (i32, i32) {
    %c0_i32 = arith.constant 0 : i32
    %c0_i32_0 = arith.constant 0 : i32
    %c0_i32_1 = arith.constant 0 : i32
    return %c0_i32, %c0_i32_0 : i32, i32
  }
  func.func @transform_5(%arg0: i32) -> (i32, i32) {
    %c0_i32 = arith.constant 0 : i32
    %c0_i32_0 = arith.constant 0 : i32
    %c0_i32_1 = arith.constant 0 : i32
    return %c0_i32, %c0_i32_0 : i32, i32
  }
  func.func @transform_6(%arg0: i32) -> (i32, i32) {
    %c0_i32 = arith.constant 0 : i32
    %c0_i32_0 = arith.constant 0 : i32
    %c0_i32_1 = arith.constant 0 : i32
    return %c0_i32, %c0_i32_0 : i32, i32
  }
  func.func @transform_7(%arg0: i32) -> (i32, i32) {
    %c0_i32 = arith.constant 0 : i32
    %c0_i32_0 = arith.constant 0 : i32
    %c0_i32_1 = arith.constant 0 : i32
    return %c0_i32, %c0_i32_0 : i32, i32
  }
  func.func @transform_8(%arg0: i32) -> (i32, i32) {
    %c0_i32 = arith.constant 0 : i32
    %c0_i32_0 = arith.constant 0 : i32
    return %c0_i32, %arg0 : i32, i32
  }
}

</mosaic_0001>

<bundles_post_ra>
// kernel: tpu_custom_call.1
= control target key start
LH: loop header
LB: loop body
LE: loop exit
PB: predicated region body
PF: predicated region fallthrough
CT: control target
= control target key end

     0   :  { %13 = vsyncpa [#allocation3], 0  ;;  %s5157_s0 = inlined_call_operand.vmem [shape: f32[1,3000], index: 0, kind: input, shape index: {}]   ;;  %s5158_s1 = inlined_call_operand.hbm [shape: f32[10,3000], index: 1, kind: input, shape index: {}]   ;;  %s5159_s2 = inlined_call_operand.vmem [shape: f32[4,3000], index: 2, kind: input, shape index: {}]   ;;  %s5160_s3 = inlined_call_operand.vmem [shape: f32[10,1], index: 3, kind: input, shape index: {}]   ;;  %s5161_s4 = inlined_call_operand.vmem [shape: f32[16,10], index: 4, kind: input, shape index: {}]   ;;  %s5162_s5 = inlined_call_operand.vmem [shape: f32[16,1], index: 5, kind: input, shape index: {}]   ;;  %s5163_s6 = inlined_call_operand.vmem [shape: f32[36,16], index: 6, kind: input, shape index: {}]   ;;  %s5164_s7 = inlined_call_operand.vmem [shape: f32[36,1], index: 7, kind: input, shape index: {}]   ;;  %s5165_s8 = inlined_call_operand.hbm [shape: f32[10,3000], index: 8, kind: output, shape index: {}]  }
   0x1   :  { %15 = vsyncpa [#allocation3 + $0x1], 0 }
   0x2   :  { %16 = vsyncpa [#allocation4], 0 }
   0x3   :  { %18 = vsyncpa [#allocation4 + $0x1], 0  ;;  %s3511_s27 = smov 0   ;;  %s3513_s28 = smov 0  }
   0x4   :  { %s3515_s29 = smov 0   ;;  %s3517_s30 = smov 0  }
   0x5 LB: > { %s3532_s9 = sadd.s32 4294967295, %s3447_s30   ;;  %s3081_s10 = sadd.s32 4294967294, %s3447_s30   ;;  %s3447_s30 = sphi %s3517_s30, %s5385_s30   ;;  %s3443_s29 = sphi %s3515_s29, %s5384_s29   ;;  %s3439_s28 = sphi %s3513_s28, %s5383_s28   ;;  %s3435_s27 = sphi %s3511_s27, %s5382_s27  }
   0x6   : > { %s3536_s11 = sadd.s32 1, %s3447_s30   ;;  %s57_s12 = sadd.s32 1, %s3443_s29 }
   0x7   : > { %s54_s13 = ssub.s32 %s3447_s30, %s3536_s11  ;;  %p64_p0 = scmp.ne.s32.totalorder %s3443_s29, %s3439_s28 }
   0x8   : > { %p55_p1 = scmp.eq.s32.totalorder %s54_s13, 0  ;;  %p65_p2 = scmp.eq.s32.totalorder %s3447_s30, 0 }
   0x9   : > { %p70_p3 = scmp.ne.s32.totalorder %s3439_s28, %s3435_s27  ;;  %p71_p4 = scmp.eq.s32.totalorder %s3532_s9, 0 }
   0xa   : > { %s3548_s14 = scalar_select %p55_p1, %s3443_s29, %s57_s12  }
   0xb   : > { %p66_p5 = por %p65_p2, %p64_p0  ;;  %p3550_p6 = por %p71_p4, %p70_p3 }
   0xc   : > { %p225_p7 = scmp.eq.s32.totalorder %s3532_s9, 3  ;;  %p231_p8 = scmp.eq.s32.totalorder %s3081_s10, 3 }
   0xd   : > { %p3223_p9 = scmp.lt.s32.totalorder %s3447_s30, 4  ;;  %s274_s18 = sand.u32 1, %s3443_s29  }
   0xe   : > { %p3556_p10 = por %p225_p7, %p64_p0  ;;  %p3560_p11 = por %p231_p8, %p70_p3 }
   0xf   : > { %s3153_s19 = smul.u32 768, %s3447_s30  ;;  %p3571_p12 = pnand %p3223_p9, %p66_p5 }
  0x10   : > { %s5239_s16 = scalar_select %p3556_p10, 1, 0 }
  0x11   : > { %s5240_s17 = scalar_select %p3560_p11, 1, 0 }
  0x12   : > { %s3185_s20 = smul.u32 96, %s274_s18  ;;  %s3569_s23 = scalar_lea.hbm %s5158_s1, %s3153_s19 }
  0x13   : > { %s3578_s10 = scalar_lea.sflag [#allocation3], %s274_s18  ;;  %s3351_s12 = scalar_lea.hbm %s3569_s23, 1536 }
  0x14   : > { %s278_s25 = scalar_lea.vmem [#allocation2], %s3185_s20  ;;  %p3352_p0 = scmp.ne.s32.totalorder %s3569_s23, %s3351_s12 }
  0x15   : > { %s285_s26 = sshll.u32 %s278_s25, 4  ;;  %p3353_p1 = pneg %p3571_p12  ;;  %s3575_s26 = int_to_ptr.vmem [resolvable:$true] %s285_s26 }
  0x16   : > { %s3356_s21 = scalar_lea.hbm %s5158_s1, 6144  ;;  %p3357_p4 = scmp.lt.u32.totalorder %s3569_s23, %s5158_s1 }
  0x17   : > { %p3354_p2 = pnand %p3353_p1, %p3352_p0  ;;  %p3358_p5 = scmp.lt.u32.totalorder %s3356_s21, %s3351_s12 }
  0x18   : > { %p3360_p8 = scmp.lt.u32.totalorder %s3351_s12, %s3569_s23 }
  0x19   : > { %p3355_p3 = pneg %p3354_p2  ;;  %p3359_p7 = por %p3358_p5, %p3357_p4 }
  0x1b   : > { %p3361_p9 = por %p3360_p8, %p3359_p7 }
  0x1d   : > { %p3362_p13 = pnand %p3361_p9, %p3355_p3 }
  0x1f   : > { %3365 = shalt.err (!%p3362_p13)
}
  0x20   : > { %s3366_s18 = scalar_lea.vmem %s3575_s26, 1536  ;;  %s3449_s25 = smov [#allocation2]  }
  0x21   : > { %p3367_p0 = scmp.ne.s32.totalorder %s3575_s26, %s3366_s18  ;;  %s3371_s13 = sshll.u32 %s3449_s25, 4  ;;  %s3372_s13 = int_to_ptr.vmem [resolvable:$false] %s3371_s13 }
  0x22   : > { %s3373_s19 = scalar_lea.vmem %s3372_s13, 3072  ;;  %p3374_p10 = scmp.lt.s32.totalorder %s3575_s26, %s3372_s13 }
  0x23   : > { %p3369_p2 = pnand %p3367_p0, %p3353_p1  ;;  %p3375_p4 = scmp.lt.s32.totalorder %s3373_s19, %s3366_s18 }
  0x25   : > { %p3370_p11 = pneg %p3369_p2  ;;  %p3376_p5 = por %p3375_p4, %p3374_p10 }
  0x27   : > { %p3377_p7 = pnand %p3376_p5, %p3370_p11 }
  0x29   : > { %3380 = shalt.err (!%p3377_p7)
}
  0x2a   : > { %s3450_s12 = smov 3072   ;;  %s3451_s21 = smov 768  }
  0x2b   : > { %s3452_s22 = smov 48   ;;  %p302_p13 = scmp.lt.s32.totalorder %s3447_s30, 5 }
  0x2c   : > { %3218 = dma.hbm_to_vmem [thread:$0]  (!%p3571_p12), %s3569_s23, 1536, %s3575_s26, %s3578_s10, %s3450_s12, %s3451_s21, %s3452_s22  }
  0x2d   : > { %p5242_p1 = scmp.ge.s32.totalorder %s3447_s30, 1 }
  0x2f   : > { %p303_p3 = pnand %p5242_p1, %p302_p13 }
  0x31   : > { %306 = sbr.rel (%p303_p3) target bundleno = 985 (0x3d9), region = 52 }
  0x38   : > { %s3610_s20 = sand.u32 1, %s3439_s28  }
  0x39   : > { %s3186_s18 = smul.u32 96, %s3610_s20  ;;  %s309_s25 = scalar_lea.sflag [#allocation3], %s3610_s20 }
  0x3b   : > { %s3616_s13 = scalar_lea.vmem [#allocation2], %s3186_s18 }
  0x3c   : > { %3426 = dma.done.wait (%p3550_p6), %s309_s25, 1536  }
  0x3d   : > { %3428 = vsyncadd (%p3550_p6), %s309_s25, 4294965760  ;;  %v3453_v0 = vmov 0   ;;  %v382_v1 = vld [vmem:[%s5160_s3] sm:$0x1]  ;;  %v1618_v3 = vld [vmem:[%s5164_s7 + $0x10] sm:$0xff]  ;;  %s354_s23 = smul.u32 6, %s3532_s9  ;;  %v389_v6 = vlaneseq }
  0x3e   : > { %3272 = vset.pattern.permute.xlu0 %v3453_v0  ;;  %3273 = vset.pattern.permute.xlu1 %v3453_v0  ;;  %v425_v2 = vld [vmem:[%s5160_s3] sm:$0x7f]  ;;  %v1617_v5 = vld [vmem:[%s5164_s7 + $0x8] sm:$0xff]  ;;  %vm461_vm0 = vcmask 1046528   ;;  %s2974_s12 = scalar_lea.sflag [#allocation4], %s3610_s20  ;;  %p5380_p11 = scmp.ne.s32.totalorder %s5239_s16, 0 }
  0x3f   : > { %385 = vperm.xlu0 %3272, %v382_v1   ;;  %v1616_v4 = vld [vmem:[%s5164_s7] sm:$0xff]  ;;  %p355_p6 = scmp.lt.s32.totalorder %s354_s23, 23  ;;  %v3644_v7 = vshrl.u32 %v389_v6, 7  ;;  %s3462_s21 = smov [#allocation5]  }
  0x41   : > { %s5387_s23 = smov (!%p355_p6, %s354_s23), 23  ;;  %5243 = vst [vmem:[#allocation8_spill] sm:$0xff] %v3644_v7  ;;  %v3647_v9 = vsub.s32 2, %v3644_v7  ;;  %v3650_v10 = vsub.s32 3, %v3644_v7  ;;  %v3659_v14 = vsub.s32 0, %v3644_v7  ;;  %v3662_v15 = vsub.s32 4, %v3644_v7 }
  0x42   : > { %s357_s10 = scalar_lea.vmem %s5157_s0, %s5387_s23  ;;  %v5167_v25 = vsub.s32 5, %v3644_v7  ;;  %s3086_s22 = sshll.u32 %s5387_s23, 2 }
  0x43   : > { %428 = vperm.xlu0 %3272, %v425_v2   ;;  %v367_v8 = vld [vmem:[%s357_s10] sm:$0x3f]  ;;  %5244 = vst [vmem:[#allocation9_spill] sm:$0xff] %v3647_v9  ;;  %5245 = vst [vmem:[#allocation10_spill] sm:$0xff] %v3650_v10  ;;  %s4453_s26 = scalar_lea.vmem %s5159_s2, %s3086_s22  ;;  %s3385_s22 = sshll.u32 %s3462_s21, 4  ;;  %s3386_s22 = int_to_ptr.vmem [resolvable:$false] %s3385_s22 }
  0x44   : > { %v3652_v11 = vmul.f32 0.25, %v367_v8  ;;  %5246 = vst [vmem:[#allocation11_spill] sm:$0xff] %v3662_v15  ;;  %s3387_s25 = scalar_lea.vmem %s3386_s22, 3072 }
  0x46   : > { %v400_v12 = vrot.slane %v3652_v11, %v3647_v9  ;;  %v404_v13 = vrot.slane %v3652_v11, %v3650_v10  ;;  %v392_v19 = vrot.slane %v3652_v11, %v3659_v14  ;;  %v408_v21 = vrot.slane %v3652_v11, %v3662_v15 }
  0x47   : > { %1633 = vperm.xlu0 %3272, %v1618_v3   ;;  %v3688_v33 = vrot.slane %v3652_v11, %v5167_v25  ;;  %v5176_v3 = vmov 683565275   ;;  %3277 = vrcp.f32 %v3652_v11 }
  0x4b   : > { %1623 = vperm.xlu0 %3272, %v1616_v4  }
  0x4f   : > { %1628 = vperm.xlu0 %3272, %v1617_v5   ;;  %v3455_v5 = vmov 2475754826  }
  0xbe   : > { %v3664_v16 = vpop.permute.xlu0 %385 }
  0xbf   : > { %v421_v17 = vmul.f32 %v400_v12, %v3664_v16  ;;  %v422_v18 = vmul.f32 %v404_v13, %v3664_v16  ;;  %v419_v26 = vmul.f32 %v392_v19, %v3664_v16  ;;  %v423_v30 = vmul.f32 %v408_v21, %v3664_v16 }
  0xc0   : > { %v424_v41 = vmul.f32 %v3688_v33, %v3664_v16 }
  0xc1   : > { %v439_v20 = vadd.f32 1.5707964, %v421_v17  ;;  %v440_v22 = vadd.f32 1.5707964, %v422_v18  ;;  %v437_v34 = vadd.f32 1.5707964, %v419_v26 }
  0xc2   : > { %v3672_v23 = vpop.permute.xlu0 %428  ;;  %v441_v38 = vadd.f32 1.5707964, %v423_v30  ;;  %v3700_v52 = vadd.f32 1.5707964, %v424_v41 }
  0xc3   : > { %v451_v24 = vrot.slane %v439_v20, 1  ;;  %v452_v27 = vrot.slane %v440_v22, 1  ;;  %v433_v28 = vmul.f32 %v3672_v23, %v400_v12  ;;  %v434_v29 = vmul.f32 %v3672_v23, %v404_v13 }
  0xc4   : > { %v449_v42 = vrot.slane %v437_v34, 1  ;;  %v431_v43 = vmul.f32 %v3672_v23, %v392_v19  ;;  %v453_v48 = vrot.slane %v441_v38, 1  ;;  %v435_v49 = vmul.f32 %v3672_v23, %v408_v21 }
  0xc5   : > { %v3680_v31 = vsel %vm461_vm0, %v433_v28, %v451_v24  ;;  %v3683_v32 = vsel %vm461_vm0, %v434_v29, %v452_v27  ;;  %v454_v60 = vrot.slane %v3700_v52, 1  ;;  %v5174_v13 = vmov 2131351028  }
  0xc6   : > { %v5171_v35 = vand.u32 2147483647, %v3680_v31  ;;  %v679_v36 = vand.u32 2139095040, %v3680_v31  ;;  %v783_v37 = vand.u32 2139095040, %v3683_v32  ;;  %v5170_v46 = vand.u32 2147483647, %v3683_v32 }
  0xc7   : > { %v3703_v53 = vsel %vm461_vm0, %v431_v43, %v449_v42  ;;  %v3708_v56 = vsel %vm461_vm0, %v435_v49, %v453_v48  ;;  %v5172_v19 = vmov 2102212464   ;;  %v3458_v22 = vmov 920167782  }
  0xc8   : > { %v680_v39 = vshrl.u32 %v679_v36, 23  ;;  %v784_v40 = vshrl.u32 %v783_v37, 23  ;;  %v683_v45 = vand.u32 8388607, %v5171_v35  ;;  %v787_v55 = vand.u32 8388607, %v5170_v46 }
  0xc9   : > { %v471_v61 = vand.u32 2139095040, %v3703_v53  ;;  %v887_v1 = vand.u32 2139095040, %v3708_v56  ;;  %v3459_v27 = vmov 1326507024  }
  0xca   : > { %v3095_v44 = vadd.s32 4294967169, %v680_v39  ;;  %v3099_v47 = vadd.s32 4294967169, %v784_v40  ;;  %v684_v54 = vor.u32 8388608, %v683_v45  ;;  %v788_v0 = vor.u32 8388608, %v787_v55 }
  0xcb   : > { %v888_v39 = vshrl.u32 %v887_v1, 23 }
  0xcc   : > { %v686_v50 = vadd.s32 1, %v3095_v44  ;;  %v790_v51 = vadd.s32 1, %v3099_v47  ;;  %v3712_v63 = vshll.u32 %v684_v54, 8  ;;  %v3727_v55 = vshll.u32 %v788_v0, 8 }
  0xce   : > { %vm687_vm1 = vcmp.gt.s32.totalorder %v686_v50, 0  ;;  %vm791_vm2 = vcmp.gt.s32.totalorder %v790_v51, 0 }
  0xcf   : > { %v688_v57 = vsel %vm687_vm1, %v686_v50, 0  ;;  %v792_v59 = vsel %vm791_vm2, %v790_v51, 0 }
  0xd0   : > { %v690_v58 = vand.u32 31, %v688_v57  ;;  %v689_v2 = vshrl.u32 %v688_v57, 5  ;;  %v794_v8 = vand.u32 31, %v792_v59  ;;  %v793_v54 = vshrl.u32 %v792_v59, 5 }
  0xd2   : > { %v691_v62 = vsub.s32 32, %v690_v58  ;;  %v693_v4 = vshll.u32 %v5176_v3, %v690_v58  ;;  %v696_v6 = vshll.u32 %v3455_v5, %v690_v58  ;;  %v699_v18 = vshll.u32 %v5174_v13, %v690_v58 }
  0xd3   : > { %v702_v21 = vshll.u32 %v5172_v19, %v690_v58  ;;  %v705_v26 = vshll.u32 %v3458_v22, %v690_v58  ;;  %vm708_vm3 = vcmp.lt.s32.totalorder %v689_v2, 1  ;;  %vm709_vm4 = vcmp.lt.s32.totalorder %v689_v2, 2 }
  0xd4   : > { %v694_v12 = vshrl.u32 %v3455_v5, %v691_v62  ;;  %v697_v17 = vshrl.u32 %v5174_v13, %v691_v62  ;;  %v700_v20 = vshrl.u32 %v5172_v19, %v691_v62  ;;  %v703_v24 = vshrl.u32 %v3458_v22, %v691_v62 }
  0xd5   : > { %v706_v28 = vshrl.u32 %v3459_v27, %v691_v62  ;;  %v692_v29 = vshrl.u32 %v5176_v3, %v691_v62  ;;  %vm710_vm5 = vcmp.lt.s32.totalorder %v689_v2, 3  ;;  %vm711_vm6 = vcmp.lt.s32.totalorder %v689_v2, 4 }
  0xd6   : > { %v695_v30 = vor.u32 %v694_v12, %v693_v4  ;;  %v698_v34 = vor.u32 %v697_v17, %v696_v6  ;;  %v701_v36 = vor.u32 %v700_v20, %v699_v18  ;;  %v704_v37 = vor.u32 %v703_v24, %v702_v21 }
  0xd7   : > { %v707_v38 = vor.u32 %v706_v28, %v705_v26  ;;  %v795_v49 = vsub.s32 32, %v794_v8  ;;  %v797_v12 = vshll.u32 %v5176_v3, %v794_v8  ;;  %v800_v59 = vshll.u32 %v3455_v5, %v794_v8 }
  0xd8   : > { %v712_v40 = vsel %vm708_vm3, %v692_v29, %v695_v30  ;;  %v713_v41 = vsel %vm711_vm6, %v701_v36, 2102212464  ;;  %v716_v42 = vsel %vm708_vm3, %v695_v30, %v698_v34  ;;  %v717_v43 = vsel %vm711_vm6, %v704_v37, 920167782 }
  0xd9   : > { %v720_v44 = vsel %vm708_vm3, %v698_v34, %v701_v36  ;;  %v714_v45 = vsel %vm710_vm5, %v698_v34, %v713_v41  ;;  %v718_v47 = vsel %vm710_vm5, %v701_v36, %v717_v43  ;;  %v721_v48 = vsel %vm711_vm6, %v707_v38, 1326507024 }
  0xda   : > { %v719_v50 = vsel %vm709_vm4, %v716_v42, %v718_v47  ;;  %v722_v51 = vsel %vm710_vm5, %v704_v37, %v721_v48  ;;  %v715_v57 = vsel %vm709_vm4, %v712_v40, %v714_v45  ;;  %v798_v17 = vshrl.u32 %v3455_v5, %v795_v49 }
  0xdb   : > { %v723_v58 = vsel %vm709_vm4, %v720_v44, %v722_v51  ;;  %v3732_v62 = vmul.u32.u64.low %v3712_v63, %v719_v50  ;;  %v3733_v1 = vmul.u32.u64.high %v3712_v63, %v719_v50, %v3732_v62  ;;  %v801_v0 = vshrl.u32 %v5174_v13, %v795_v49 }
  0xdc   : > { %v3737_v4 = vmul.u32.u64.low %v3712_v63, %v723_v58  ;;  %v3738_v6 = vmul.u32.u64.high %v3712_v63, %v723_v58, %v3737_v4  ;;  %v803_v2 = vshll.u32 %v5174_v13, %v794_v8  ;;  %v804_v18 = vshrl.u32 %v5172_v19, %v795_v49 }
  0xdd   : > { %v799_v20 = vor.u32 %v798_v17, %v797_v12  ;;  %v806_v21 = vshll.u32 %v5172_v19, %v794_v8  ;;  %v807_v24 = vshrl.u32 %v3458_v22, %v795_v49  ;;  %v809_v26 = vshll.u32 %v3458_v22, %v794_v8 }
  0xde   : > { %v734_v28 = vadd.s32 1, %v3733_v1  ;;  %v802_v29 = vor.u32 %v801_v0, %v800_v59  ;;  %v805_v30 = vor.u32 %v804_v18, %v803_v2  ;;  %v810_v34 = vshrl.u32 %v3459_v27, %v795_v49 }
  0xdf   : > { %v731_v36 = vmul.u32 %v3712_v63, %v715_v57  ;;  %vm733_vm7 = vc.u32 %v3738_v6, %v3732_v62  ;;  %v808_v37 = vor.u32 %v807_v24, %v806_v21  ;;  %v3103_v38 = vadd.s32 4294967169, %v888_v39 }
  0xe0   : > { %v735_v40 = vsel %vm733_vm7, %v734_v28, %v3733_v1  ;;  %v796_v41 = vshrl.u32 %v5176_v3, %v795_v49  ;;  %v811_v42 = vor.u32 %v810_v34, %v809_v26  ;;  %vm812_vm8 = vcmp.lt.s32.totalorder %v793_v54, 1 }
  0xe1   : > { %v736_v8 = vadd.s32 %v735_v40, %v731_v36  ;;  %vm814_vm9 = vcmp.lt.s32.totalorder %v793_v54, 3  ;;  %vm815_vm10 = vcmp.lt.s32.totalorder %v793_v54, 4  ;;  %v820_v43 = vsel %vm812_vm8, %v799_v20, %v802_v29 }
  0xe2   : > { %v817_v44 = vsel %vm815_vm10, %v805_v30, 2102212464  ;;  %v821_v45 = vsel %vm815_vm10, %v808_v37, 920167782  ;;  %v824_v47 = vsel %vm812_vm8, %v802_v29, %v805_v30  ;;  %v825_v48 = vsel %vm815_vm10, %v811_v42, 1326507024 }
  0xe3   : > { %v737_v63 = vadd.s32 536870912, %v736_v8  ;;  %vm813_vm11 = vcmp.lt.s32.totalorder %v793_v54, 2  ;;  %v822_v50 = vsel %vm814_vm9, %v805_v30, %v821_v45  ;;  %v826_v39 = vsel %vm814_vm9, %v808_v37, %v825_v48 }
  0xe4   : > { %v816_v51 = vsel %vm812_vm8, %v796_v41, %v799_v20  ;;  %v823_v57 = vsel %vm813_vm11, %v820_v43, %v822_v50  ;;  %v827_v49 = vsel %vm813_vm11, %v824_v47, %v826_v39  ;;  %v894_v58 = vadd.s32 1, %v3103_v38 }
  0xe5   : > { %v3760_v1 = vshrl.u32 %v737_v63, 30  ;;  %v818_v4 = vsel %vm814_vm9, %v802_v29, %v817_v44  ;;  %v3764_v12 = vmul.u32.u64.low %v3727_v55, %v827_v49  ;;  %v3765_v17 = vmul.u32.u64.high %v3727_v55, %v827_v49, %v3764_v12 }
  0xe6   : > { %v436_v59 = vmul.f32 %v3672_v23, %v3688_v33  ;;  %v3770_v0 = vmul.u32.u64.low %v3727_v55, %v823_v57  ;;  %v3771_v2 = vmul.u32.u64.high %v3727_v55, %v823_v57, %v3770_v0  ;;  %vm895_vm12 = vcmp.gt.s32.totalorder %v894_v58, 0 }
  0xe7   : > { %v472_v18 = vshrl.u32 %v471_v61, 23  ;;  %v739_v20 = vshll.u32 %v3760_v1, 30  ;;  %v5169_v21 = vand.u32 2147483647, %v3708_v56  ;;  %v896_v24 = vsel %vm895_vm12, %v894_v58, 0 }
  0xe8   : > { %v819_v26 = vsel %vm813_vm11, %v816_v51, %v818_v4  ;;  %v898_v28 = vand.u32 31, %v896_v24  ;;  %vm837_vm13 = vc.u32 %v3765_v17, %v3770_v0  ;;  %v3784_v33 = vsub.s32 1, %v3644_v7 }
  0xe9   : > { %v3779_v29 = vsub.s32 %v736_v8, %v739_v20  ;;  %v3789_v61 = vsel %vm461_vm0, %v436_v59, %v454_v60  ;;  %v838_v30 = vadd.s32 1, %v3771_v2  ;;  %v3087_v36 = vadd.s32 4294967169, %v472_v18 }
  0xea   : > { %v899_v34 = vsub.s32 32, %v898_v28  ;;  %v835_v37 = vmul.u32 %v3727_v55, %v819_v26  ;;  %v891_v38 = vand.u32 8388607, %v5169_v21  ;;  %v897_v41 = vshrl.u32 %v896_v24, 5 }
  0xeb   : > { %v742_v54 = vsub.s32 0, %v3779_v29  ;;  %v839_v40 = vsel %vm837_vm13, %v838_v30, %v3771_v2  ;;  %v901_v8 = vshll.u32 %v5176_v3, %v898_v28  ;;  %v904_v43 = vshll.u32 %v3455_v5, %v898_v28 }
  0xec   : > { %v902_v42 = vshrl.u32 %v3455_v5, %v899_v34  ;;  %v905_v52 = vshrl.u32 %v5174_v13, %v899_v34  ;;  %v840_v60 = vadd.s32 %v839_v40, %v835_v37  ;;  %v908_v44 = vshrl.u32 %v5172_v19, %v899_v34 }
  0xed   : > { %v3096_v45 = vmin.u32 %v742_v54, %v3779_v29  ;;  %v907_v55 = vshll.u32 %v5174_v13, %v898_v28  ;;  %v910_v47 = vshll.u32 %v5172_v19, %v898_v28  ;;  %v911_v48 = vshrl.u32 %v3458_v22, %v899_v34 }
  0xee   : > { %v841_v63 = vadd.s32 536870912, %v840_v60  ;;  %v892_v50 = vor.u32 8388608, %v891_v38  ;;  %v903_v39 = vor.u32 %v902_v42, %v901_v8  ;;  %v906_v51 = vor.u32 %v905_v52, %v904_v43 }
  0xef   : > { %v909_v57 = vor.u32 %v908_v44, %v907_v55  ;;  %v912_v49 = vor.u32 %v911_v48, %v910_v47  ;;  %v913_v58 = vshll.u32 %v3458_v22, %v898_v28  ;;  %v914_v4 = vshrl.u32 %v3459_v27, %v899_v34 }
  0xf0   : > { %v396_v12 = vrot.slane %v3652_v11, %v3784_v33  ;;  %v3810_v59 = vshrl.u32 %v841_v63, 30  ;;  %v991_v2 = vand.u32 2139095040, %v3789_v61  ;;  %v744_v18 = vclz %v3096_v45 }
  0xf1   : > { %v915_v20 = vor.u32 %v914_v4, %v913_v58  ;;  %vm916_vm14 = vcmp.lt.s32.totalorder %v897_v41, 1  ;;  %vm919_vm15 = vcmp.lt.s32.totalorder %v897_v41, 4  ;;  %vm918_vm1 = vcmp.lt.s32.totalorder %v897_v41, 3 }
  0xf2   : > { %v843_v24 = vshll.u32 %v3810_v59, 30  ;;  %v924_v26 = vsel %vm916_vm14, %v903_v39, %v906_v51  ;;  %v925_v30 = vsel %vm919_vm15, %v912_v49, 920167782  ;;  %v478_v28 = vadd.s32 1, %v3087_v36 }
  0xf3   : > { %v921_v54 = vsel %vm919_vm15, %v909_v57, 2102212464  ;;  %v926_v37 = vsel %vm918_vm1, %v909_v57, %v925_v30  ;;  %v932_v38 = vshll.u32 %v892_v50, 8  ;;  %v900_v42 = vshrl.u32 %v5176_v3, %v899_v34 }
  0xf4   : > { %v3816_v40 = vsub.s32 %v840_v60, %v843_v24  ;;  %vm917_vm2 = vcmp.lt.s32.totalorder %v897_v41, 2  ;;  %v928_v52 = vsel %vm916_vm14, %v906_v51, %v909_v57  ;;  %v3097_v8 = vadd.s32 4294967294, %v744_v18 }
  0xf5   : > { %v927_v43 = vsel %vm917_vm2, %v924_v26, %v926_v37  ;;  %v929_v44 = vsel %vm919_vm15, %v915_v20, 1326507024  ;;  %v992_v45 = vshrl.u32 %v991_v2, 23  ;;  %v920_v36 = vsel %vm916_vm14, %v900_v42, %v903_v39 }
  0xf6   : > { %v846_v55 = vsub.s32 0, %v3816_v40  ;;  %v922_v47 = vsel %vm918_vm1, %v906_v51, %v921_v54  ;;  %v930_v48 = vsel %vm918_vm1, %v912_v49, %v929_v44  ;;  %vm479_vm3 = vcmp.gt.s32.totalorder %v478_v28, 0 }
  0xf7   : > { %v931_v60 = vsel %vm917_vm2, %v928_v52, %v930_v48  ;;  %v3826_v63 = vmul.u32.u64.low %v932_v38, %v927_v43  ;;  %v3827_v34 = vmul.u32.u64.high %v932_v38, %v927_v43, %v3826_v63  ;;  %v3107_v50 = vadd.s32 4294967169, %v992_v45 }
  0xf8   : > { %v3100_v57 = vmin.u32 %v846_v55, %v3816_v40  ;;  %vm3098_vm4 = vcmp.lt.s32.totalorder %v3097_v8, 0  ;;  %v3831_v58 = vmul.u32.u64.low %v932_v38, %v931_v60  ;;  %v3832_v4 = vmul.u32.u64.high %v932_v38, %v931_v60, %v3831_v58 }
  0xf9   : > { %v998_v2 = vadd.s32 1, %v3107_v50  ;;  %v420_v39 = vmul.f32 %v396_v12, %v3664_v16  ;;  %v923_v49 = vsel %vm917_vm2, %v920_v36, %v922_v47  ;;  %v942_v18 = vadd.s32 1, %v3827_v34 }
  0xfa   : > { %v848_v51 = vclz %v3100_v57  ;;  %v480_v20 = vsel %vm479_vm3, %v478_v28, 0  ;;  %v3837_v24 = vsel %vm3098_vm4, 0, %v3097_v8  ;;  %v939_v54 = vmul.u32 %v932_v38, %v923_v49 }
  0xfb   : > { %vm999_vm5 = vcmp.gt.s32.totalorder %v998_v2, 0  ;;  %vm941_vm6 = vc.u32 %v3832_v4, %v3826_v63  ;;  %v438_v42 = vadd.f32 1.5707964, %v420_v39  ;;  %v3842_v16 = vand.u32 31, %v480_v20 }
  0xfc   : > { %v1000_v26 = vsel %vm999_vm5, %v998_v2, 0  ;;  %v3101_v30 = vadd.s32 4294967294, %v848_v51  ;;  %v943_v52 = vsel %vm941_vm6, %v942_v18, %v3827_v34  ;;  %v752_v44 = vsub.s32 4294967266, %v3837_v24 }
  0xfd   : > { %v1002_v37 = vand.u32 31, %v1000_v26  ;;  %v944_v41 = vadd.s32 %v943_v52, %v939_v54  ;;  %v5168_v28 = vand.u32 2147483647, %v3789_v61  ;;  %v450_v45 = vrot.slane %v438_v42, 1 }
  0xfe   : > { %vm3102_vm7 = vcmp.lt.s32.totalorder %v3101_v30, 0  ;;  %v432_v38 = vmul.f32 %v3672_v23, %v396_v12  ;;  %v3847_v55 = vshrl.u32 %v480_v20, 5  ;;  %v3850_v36 = vsub.s32 32, %v3842_v16 }
  0xff   : > { %v1003_v43 = vsub.s32 32, %v1002_v37  ;;  %v945_v8 = vadd.s32 536870912, %v944_v41  ;;  %v494_v34 = vshll.u32 %v5172_v19, %v3842_v16  ;;  %v3858_v50 = vadd.s32 127, %v752_v44 }
 0x100   : > { %v3860_v57 = vsel %vm3102_vm7, 0, %v3101_v30  ;;  %v995_v23 = vand.u32 8388607, %v5168_v28  ;;  %v1005_v58 = vshll.u32 %v5176_v3, %v1002_v37  ;;  %v1008_v2 = vshll.u32 %v3455_v5, %v1002_v37 }
 0x101   : > { %v3852_v47 = vshrl.u32 %v945_v8, 30  ;;  %v1006_v48 = vshrl.u32 %v3455_v5, %v1003_v43  ;;  %v1009_v60 = vshrl.u32 %v5174_v13, %v1003_v43  ;;  %v1012_v39 = vshrl.u32 %v5172_v19, %v1003_v43 }
 0x102   : > { %v1001_v51 = vshrl.u32 %v1000_v26, 5  ;;  %v1011_v49 = vshll.u32 %v5174_v13, %v1002_v37  ;;  %v1014_v18 = vshll.u32 %v5172_v19, %v1002_v37  ;;  %v1015_v20 = vshrl.u32 %v3458_v22, %v1003_v43 }
 0x103   : > { %v947_v12 = vshll.u32 %v3852_v47, 30  ;;  %v856_v30 = vsub.s32 4294967266, %v3860_v57  ;;  %v1007_v42 = vor.u32 %v1006_v48, %v1005_v58  ;;  %v1010_v52 = vor.u32 %v1009_v60, %v1008_v2 }
 0x104   : > { %v1013_v44 = vor.u32 %v1012_v39, %v1011_v49  ;;  %v1016_v8 = vor.u32 %v1015_v20, %v1014_v18  ;;  %v1017_v25 = vshll.u32 %v3458_v22, %v1002_v37  ;;  %v1018_v28 = vshrl.u32 %v3459_v27, %v1003_v43 }
 0x105   : > { %v3872_v54 = vsub.s32 %v944_v41, %v947_v12  ;;  %v495_v26 = vshrl.u32 %v3458_v22, %v3850_v36  ;;  %v732_v21 = vadd.s32 %v3732_v62, %v3738_v6  ;;  %v748_v46 = vsub.s32 32, %v3837_v24 }
 0x106   : > { %v754_v41 = vshll.u32 %v3858_v50, 23  ;;  %v996_v48 = vor.u32 8388608, %v995_v23  ;;  %v1004_v60 = vshrl.u32 %v5176_v3, %v1003_v43  ;;  %v1019_v12 = vor.u32 %v1018_v28, %v1017_v25 }
 0x107   : > { %v950_v35 = vsub.s32 0, %v3872_v54  ;;  %v857_v58 = vadd.s32 127, %v856_v30  ;;  %vm1020_vm8 = vcmp.lt.s32.totalorder %v1001_v51, 1  ;;  %vm1023_vm9 = vcmp.lt.s32.totalorder %v1001_v51, 4 }
 0x108   : > { %vm1022_vm10 = vcmp.lt.s32.totalorder %v1001_v51, 3  ;;  %v1025_v2 = vsel %vm1023_vm9, %v1013_v44, 2102212464  ;;  %v1028_v39 = vsel %vm1020_vm8, %v1007_v42, %v1010_v52  ;;  %v1029_v49 = vsel %vm1023_vm9, %v1016_v8, 920167782 }
 0x109   : > { %v3104_v37 = vmin.u32 %v950_v35, %v3872_v54  ;;  %vm1021_vm11 = vcmp.lt.s32.totalorder %v1001_v51, 2  ;;  %v1030_v6 = vsel %vm1022_vm10, %v1013_v44, %v1029_v49  ;;  %v1032_v18 = vsel %vm1020_vm8, %v1010_v52, %v1013_v44 }
 0x10a   : > { %v1031_v20 = vsel %vm1021_vm11, %v1028_v39, %v1030_v6  ;;  %v1033_v50 = vsel %vm1023_vm9, %v1019_v12, 1326507024  ;;  %v1036_v23 = vshll.u32 %v996_v48, 8  ;;  %v3887_v43 = vsel %vm461_vm0, %v432_v38, %v450_v45 }
 0x10b   : > { %v952_v62 = vclz %v3104_v37  ;;  %v852_v25 = vsub.s32 32, %v3860_v57  ;;  %v1024_v35 = vsel %vm1020_vm8, %v1004_v60, %v1007_v42  ;;  %v1026_v28 = vsel %vm1022_vm10, %v1010_v52, %v1025_v2 }
 0x10c   : > { %v1034_v30 = vsel %vm1022_vm10, %v1016_v8, %v1033_v50  ;;  %v3891_v3 = vmul.u32.u64.low %v1036_v23, %v1031_v20  ;;  %v3892_v37 = vmul.u32.u64.high %v1036_v23, %v1031_v20, %v3891_v3  ;;  %v836_v44 = vadd.s32 %v3770_v0, %v3765_v17 }
 0x10d   : > { %v3105_v19 = vadd.s32 4294967294, %v952_v62  ;;  %v1035_v13 = vsel %vm1021_vm11, %v1032_v18, %v1034_v30  ;;  %v858_v12 = vshll.u32 %v857_v58, 23  ;;  %v497_v45 = vshll.u32 %v3458_v22, %v3842_v16 }
 0x10e   : > { %v3897_v48 = vmul.u32.u64.low %v1036_v23, %v1035_v13  ;;  %v3898_v39 = vmul.u32.u64.high %v1036_v23, %v1035_v13, %v3897_v48  ;;  %v498_v38 = vshrl.u32 %v3459_v27, %v3850_v36  ;;  %v750_v42 = vshrl.u32 %v732_v21, %v748_v46 }
 0x10f   : > { %v1027_v52 = vsel %vm1021_vm11, %v1024_v35, %v1026_v28  ;;  %v3905_v8 = vor.u32 %v495_v26, %v494_v34  ;;  %v854_v60 = vshrl.u32 %v836_v44, %v852_v25  ;;  %v5179_v2 = vand.u32 2147483647, %v3887_v43 }
 0x110   : > { %v575_v17 = vand.u32 2139095040, %v3887_v43  ;;  %v749_v13 = vshll.u32 %v3779_v29, %v3837_v24  ;;  %v755_v0 = vor.u32 4788187, %v754_v41  ;;  %vm3106_vm12 = vcmp.lt.s32.totalorder %v3105_v19, 0 }
 0x111   : > { %v1046_v58 = vadd.s32 1, %v3892_v37  ;;  %v853_v49 = vshll.u32 %v3816_v40, %v3860_v57  ;;  %v859_v46 = vor.u32 4788187, %v858_v12  ;;  %v1043_v21 = vmul.u32 %v1036_v23, %v1027_v52 }
 0x112   : > { %vm1045_vm13 = vc.u32 %v3898_v39, %v3891_v3  ;;  %vm503_vm14 = vcmp.lt.s32.totalorder %v3847_v55, 4  ;;  %v751_v34 = vor.u32 %v750_v42, %v749_v13  ;;  %v576_v26 = vshrl.u32 %v575_v17, 23  ;;  %v1258_v17 = vld [vmem:[%s5162_s5] sm:$0xff] }
 0x113   : > { %v1047_v51 = vsel %vm1045_vm13, %v1046_v58, %v3892_v37  ;;  %v855_v62 = vor.u32 %v854_v60, %v853_v49  ;;  %v3918_v29 = vsel %vm3106_vm12, 0, %v3105_v19  ;;  %v579_v41 = vand.u32 8388607, %v5179_v2  ;;  %1262 = vperm.xlu1 %3273, %v1258_v17  }
 0x114   : > { %v1048_v24 = vadd.s32 %v1047_v51, %v1043_v21  ;;  %v499_v6 = vor.u32 %v498_v38, %v497_v45  ;;  %v3925_v40 = vsel %vm503_vm14, %v3905_v8, 920167782  ;;  %v3091_v57 = vadd.s32 4294967169, %v576_v26  ;;  %v1259_v51 = vld [vmem:[%s5162_s5 + $0x8] sm:$0xff] }
 0x115   : > { %v756_v18 = vand.u32 2147483647, %v755_v0  ;;  %v860_v20 = vand.u32 2147483647, %v859_v46  ;;  %v758_v23 = vcvt.s32.f32 %v751_v34  ;;  %v956_v25 = vsub.s32 32, %v3918_v29 }
 0x116   : > { %v1049_v50 = vadd.s32 536870912, %v1048_v24  ;;  %v960_v19 = vsub.s32 4294967266, %v3918_v29  ;;  %v582_v35 = vadd.s32 1, %v3091_v57  ;;  %v862_v28 = vcvt.s32.f32 %v855_v62 }
 0x117   : > { %v580_v37 = vor.u32 8388608, %v579_v41  ;;  %v5178_v44 = vand.u32 2147483647, %v3703_v53  ;;  %v3934_v12 = vsel %vm503_vm14, %v499_v6, 1326507024  ;;  %v940_v48 = vadd.s32 %v3826_v63, %v3832_v4  ;;  %1267 = vperm.xlu1 %3273, %v1259_v51  }
 0x118   : > { %v3929_v30 = vshrl.u32 %v1049_v50, 30  ;;  %vm583_vm15 = vcmp.gt.s32.totalorder %v582_v35, 0  ;;  %v486_v45 = vshrl.u32 %v3455_v5, %v3850_v36  ;;  %v3940_v38 = vmul.f32 %v758_v23, %v756_v18 }
 0x119   : > { %v3942_v42 = vmul.f32 %v862_v28, %v860_v20  ;;  %v584_v60 = vsel %vm583_vm15, %v582_v35, 0  ;;  %v3948_v13 = vshrl.u32 %v940_v48, %v956_v25  ;;  %v3950_v0 = vadd.s32 127, %v960_v19 }
 0x11a   : > { %v1051_v52 = vshll.u32 %v3929_v30, 30  ;;  %v586_v63 = vand.u32 31, %v584_v60  ;;  %v5247_v4 = vmov 683565275   ;;  %v3956_v46 = vshll.u32 %v580_v37, 8 }
 0x11b   : > { %v485_v58 = vshll.u32 %v5247_v4, %v3842_v16  ;;  %v3960_v21 = vand.u32 8388607, %v5178_v44  ;;  %v488_v34 = vshll.u32 %v3455_v5, %v3842_v16  ;;  %v585_v26 = vshrl.u32 %v584_v60, 5 }
 0x11c   : > { %v3954_v49 = vsub.s32 %v1048_v24, %v1051_v52  ;;  %v587_v62 = vsub.s32 32, %v586_v63  ;;  %v5248_v24 = vmov 2131351028   ;;  %v589_v18 = vshll.u32 %v5247_v4, %v586_v63  ;;  %v1619_v52 = vld [vmem:[%s5164_s7 + $0x18] sm:$0xff] }
 0x11d   : > { %v3967_v41 = vor.u32 %v486_v45, %v485_v58  ;;  %v489_v6 = vshrl.u32 %v5248_v24, %v3850_v36  ;;  %v491_v20 = vshll.u32 %v5248_v24, %v3842_v16  ;;  %v5249_v50 = vmov 2102212464   ;;  %1638 = vperm.xlu1 %3273, %v1619_v52  }
 0x11e   : > { %v1054_v57 = vsub.s32 0, %v3954_v49  ;;  %v492_v23 = vshrl.u32 %v5249_v50, %v3850_v36  ;;  %v590_v25 = vshrl.u32 %v3455_v5, %v587_v62  ;;  %v592_v19 = vshll.u32 %v3455_v5, %v586_v63 }
 0x11f   : > { %v593_v35 = vshrl.u32 %v5248_v24, %v587_v62  ;;  %v595_v28 = vshll.u32 %v5248_v24, %v586_v63  ;;  %v596_v48 = vshrl.u32 %v5249_v50, %v587_v62  ;;  %v598_v45 = vshll.u32 %v5249_v50, %v586_v63 }
 0x120   : > { %v3108_v37 = vmin.u32 %v1054_v57, %v3954_v49  ;;  %v599_v16 = vshrl.u32 %v3458_v22, %v587_v62  ;;  %v591_v60 = vor.u32 %v590_v25, %v589_v18  ;;  %v601_v5 = vshll.u32 %v3458_v22, %v586_v63  ;;  %v1620_v22 = vld [vmem:[%s5164_s7 + $0x20] sm:$0xf] }
 0x121   : > { %v594_v17 = vor.u32 %v593_v35, %v592_v19  ;;  %v602_v58 = vshrl.u32 %v3459_v27, %v587_v62  ;;  %v588_v51 = vshrl.u32 %v5247_v4, %v587_v62  ;;  %v597_v57 = vor.u32 %v596_v48, %v595_v28  ;;  %1643 = vperm.xlu1 %3273, %v1620_v22  }
 0x122   : > { %v1056_v24 = vclz %v3108_v37  ;;  %v600_v44 = vor.u32 %v599_v16, %v598_v45  ;;  %vm604_vm1 = vcmp.lt.s32.totalorder %v585_v26, 1  ;;  %vm606_vm2 = vcmp.lt.s32.totalorder %v585_v26, 3 }
 0x123   : > { %v603_v2 = vor.u32 %v602_v58, %v601_v5  ;;  %vm607_vm3 = vcmp.lt.s32.totalorder %v585_v26, 4  ;;  %v608_v15 = vsel %vm604_vm1, %v588_v51, %v591_v60  ;;  %v612_v9 = vsel %vm604_vm1, %v591_v60, %v594_v17 }
 0x124   : > { %v3109_v50 = vadd.s32 4294967294, %v1056_v24  ;;  %v609_v7 = vsel %vm607_vm3, %v597_v57, 2102212464  ;;  %v613_v27 = vsel %vm607_vm3, %v600_v44, 920167782  ;;  %v616_v18 = vsel %vm604_vm1, %v594_v17, %v597_v57 }
 0x125   : > { %v610_v63 = vsel %vm606_vm2, %v594_v17, %v609_v7  ;;  %v617_v25 = vsel %vm607_vm3, %v603_v2, 1326507024  ;;  %vm605_vm5 = vcmp.lt.s32.totalorder %v585_v26, 2  ;;  %v614_v62 = vsel %vm606_vm2, %v597_v57, %v613_v27 }
 0x126   : > { %vm3110_vm4 = vcmp.lt.s32.totalorder %v3109_v50, 0  ;;  %v618_v19 = vsel %vm606_vm2, %v600_v44, %v617_v25  ;;  %v615_v28 = vsel %vm605_vm5, %v612_v9, %v614_v62  ;;  %v490_v48 = vor.u32 %v489_v6, %v488_v34 }
 0x127   : > { %v1059_v35 = vsel %vm3110_vm4, 0, %v3109_v50  ;;  %v619_v37 = vsel %vm605_vm5, %v616_v18, %v618_v19  ;;  %v611_v52 = vsel %vm605_vm5, %v608_v15, %v610_v63  ;;  %v493_v60 = vor.u32 %v492_v23, %v491_v20 }
 0x128   : > { %v1060_v45 = vsub.s32 32, %v1059_v35  ;;  %v1064_v16 = vsub.s32 4294967266, %v1059_v35  ;;  %v3995_v5 = vmul.u32.u64.low %v3956_v46, %v619_v37  ;;  %v3996_v58 = vmul.u32.u64.high %v3956_v46, %v619_v37, %v3995_v5 }
 0x129   : > { %v3999_v7 = vmul.u32.u64.low %v3956_v46, %v615_v28  ;;  %v4000_v2 = vmul.u32.u64.high %v3956_v46, %v615_v28, %v3999_v7  ;;  %v962_v44 = vshll.u32 %v3950_v0, 23  ;;  %v1044_v9 = vadd.s32 %v3891_v3, %v3898_v39 }
 0x12a   : > { %v1065_v34 = vadd.s32 127, %v1064_v16  ;;  %vm500_vm6 = vcmp.lt.s32.totalorder %v3847_v55, 1  ;;  %v476_v15 = vor.u32 8388608, %v3960_v21  ;;  %v484_v26 = vshrl.u32 %v5247_v4, %v3850_v36 }
 0x12b   : > { %vm502_vm7 = vcmp.lt.s32.totalorder %v3847_v55, 3  ;;  %v508_v6 = vsel %vm500_vm6, %v3967_v41, %v490_v48  ;;  %v1062_v20 = vshrl.u32 %v1044_v9, %v1060_v45  ;;  %v627_v0 = vmul.u32 %v3956_v46, %v611_v52 }
 0x12c   : > { %v1066_v23 = vshll.u32 %v1065_v34, 23  ;;  %v510_v3 = vsel %vm502_vm7, %v493_v60, %v3925_v40  ;;  %vm629_vm8 = vc.u32 %v3996_v58, %v3999_v7  ;;  %v630_v39 = vadd.s32 1, %v4000_v2 }
 0x12d   : > { %vm501_vm9 = vcmp.lt.s32.totalorder %v3847_v55, 2  ;;  %v505_v36 = vsel %vm503_vm14, %v493_v60, 2102212464  ;;  %v1061_v4 = vshll.u32 %v3954_v49, %v1059_v35  ;;  %v504_v46 = vsel %vm500_vm6, %v484_v26, %v3967_v41 }
 0x12e   : > { %v511_v21 = vsel %vm501_vm9, %v508_v6, %v510_v3  ;;  %v512_v40 = vsel %vm500_vm6, %v490_v48, %v493_v60  ;;  %v1067_v17 = vor.u32 4788187, %v1066_v23  ;;  %v631_v24 = vsel %vm629_vm8, %v630_v39, %v4000_v2 }
 0x12f   : > { %v514_v51 = vsel %vm502_vm7, %v3905_v8, %v3934_v12  ;;  %v516_v57 = vshll.u32 %v476_v15, 8  ;;  %v1063_v49 = vor.u32 %v1062_v20, %v1061_v4  ;;  %v632_v50 = vadd.s32 %v631_v24, %v627_v0 }
 0x130   : > { %v506_v41 = vsel %vm502_vm7, %v490_v48, %v505_v36  ;;  %v515_v22 = vsel %vm501_vm9, %v512_v40, %v514_v51  ;;  %v762_v62 = vsub.s32 4, %v3760_v1  ;;  %v957_v8 = vshll.u32 %v3872_v54, %v3918_v29 }
 0x131   : > { %v4041_v63 = vmul.u32.u64.low %v516_v57, %v515_v22  ;;  %v4042_v27 = vmul.u32.u64.high %v516_v57, %v515_v22, %v4041_v63  ;;  %v4044_v18 = vmul.u32.u64.low %v516_v57, %v511_v21  ;;  %v4045_v25 = vmul.u32.u64.high %v516_v57, %v511_v21, %v4044_v18 }
 0x132   : > { %v963_v12 = vor.u32 4788187, %v962_v44  ;;  %v633_v19 = vadd.s32 536870912, %v632_v50  ;;  %vm678_vm10 = vcmp.lt.s32.totalorder %v3680_v31, 0  ;;  %v864_v35 = vxor.u32 2147483648, %v3942_v42 }
 0x133   : > { %v1068_v28 = vand.u32 2147483647, %v1067_v17  ;;  %v507_v37 = vsel %vm501_vm9, %v504_v46, %v506_v41  ;;  %vm782_vm11 = vcmp.lt.s32.totalorder %v3683_v32, 0  ;;  %v959_v48 = vor.u32 %v3948_v13, %v957_v8 }
 0x134   : > { %v4057_v45 = vshrl.u32 %v633_v19, 30  ;;  %v760_v16 = vxor.u32 2147483648, %v3940_v38  ;;  %v1070_v52 = vcvt.s32.f32 %v1063_v49  ;;  %vm525_vm12 = vc.u32 %v4042_v27, %v4044_v18 }
 0x135   : > { %v526_v54 = vadd.s32 1, %v4045_v25  ;;  %v3460_v29 = vmov 0.0   ;;  %v763_v55 = vsel %vm678_vm10, %v762_v62, %v3760_v1  ;;  %v964_v13 = vand.u32 2147483647, %v963_v12 }
 0x136   : > { %1360 = vmatprep.mubr.f32.mxu0 %v3460_v29  ;;  %1726 = vmatprep.mubr.f32.mxu1 %v3460_v29  ;;  %v635_v60 = vshll.u32 %v4057_v45, 30  ;;  %v523_v5 = vmul.u32 %v516_v57, %v507_v37  ;;  %v865_v2 = vsel %vm782_vm11, %v864_v35, %v3942_v42  ;;  %v1071_v44 = vmul.f32 %v1070_v52, %v1068_v28 }
 0x137   : > { %v369_v9 = vmul.f32 %v3652_v11, %v3652_v11  ;;  %v527_v34 = vsel %vm525_vm12, %v526_v54, %v4045_v25  ;;  %v5250_v15 = vand.u32 2147483647, %v3680_v31  ;;  %v966_v1 = vcvt.s32.f32 %v959_v48 }
 0x138   : > { %v4081_v6 = vsub.s32 %v632_v50, %v635_v60  ;;  %v528_v20 = vadd.s32 %v527_v34, %v523_v5  ;;  %v761_v42 = vsel %vm678_vm10, %v760_v16, %v3940_v38  ;;  %v5253_v0 = vand.u32 2147483647, %v3683_v32 }
 0x139   : > { %vm4077_vm13 = vcmp.le.f32.partialorder %v5250_v15, 0.7853982  ;;  %v967_v36 = vmul.f32 %v966_v1, %v964_v13  ;;  %v1072_v21 = vxor.u32 2147483648, %v1071_v44  ;;  %v370_v40 = vmul.f32 %v369_v9, %v369_v9  ;;  %v4153_v15 = vpop.eup %3277 }
 0x13a   : > { %v765_v23 = vsel %vm4077_vm13, 0, %v763_v55  ;;  %vm4090_vm14 = vcmp.le.f32.partialorder %v5253_v0, 0.7853982  ;;  %v638_v4 = vsub.s32 0, %v4081_v6  ;;  %v529_v46 = vadd.s32 536870912, %v528_v20 }
 0x13b   : > { %v868_v39 = vsel %vm4090_vm14, %v3683_v32, %v865_v2  ;;  %v866_v38 = vsub.s32 4, %v3810_v59  ;;  %v764_v17 = vsel %vm4077_vm13, %v3680_v31, %v761_v42  ;;  %v970_v24 = vsub.s32 4, %v3852_v47 }
 0x13c   : > { %v3092_v51 = vmin.u32 %v638_v4, %v4081_v6  ;;  %v4105_v57 = vshrl.u32 %v529_v46, 30  ;;  %v769_v49 = vadd.s32 3, %v765_v23  ;;  %3279 = vsinq.f32 %v868_v39 }
 0x13d   : > { %vm886_vm15 = vcmp.lt.s32.totalorder %v3708_v56, 0  ;;  %vm990_vm1 = vcmp.lt.s32.totalorder %v3789_v61, 0  ;;  %3281 = vcosq.f32 %v868_v39  ;;  %v968_v50 = vxor.u32 2147483648, %v967_v36 }
 0x13e   : > { %v375_v41 = vmul.f32 -21.0, %v3652_v11  ;;  %v640_v22 = vclz %v3092_v51  ;;  %3283 = vcosq.f32 %v764_v17  ;;  %v1073_v63 = vsel %vm990_vm1, %v1072_v21, %v1071_v44 }
 0x13f   : > { %v531_v25 = vshll.u32 %v4105_v57, 30  ;;  %v867_v62 = vsel %vm782_vm11, %v866_v38, %v3810_v59  ;;  %3285 = vsinq.f32 %v764_v17  ;;  %v5256_v8 = vand.u32 2147483647, %v3708_v56 }
 0x140   : > { %v971_v19 = vsel %vm886_vm15, %v970_v24, %v3852_v47  ;;  %v3093_v35 = vadd.s32 4294967294, %v640_v22  ;;  %v4125_v28 = vand.u32 3, %v769_v49  ;;  %v5259_v37 = vand.u32 2147483647, %v3789_v61 }
 0x141   : > { %vm4118_vm2 = vcmp.le.f32.partialorder %v5256_v8, 0.7853982  ;;  %v4134_v59 = vmul.f32 %v370_v40, %v3652_v11  ;;  %v4136_v16 = vsub.s32 %v528_v20, %v531_v25  ;;  %v969_v52 = vsel %vm886_vm15, %v968_v50, %v967_v36 }
 0x142   : > { %vm4129_vm3 = vcmp.le.f32.partialorder %v5259_v37, 0.7853982  ;;  %vm3094_vm4 = vcmp.lt.s32.totalorder %v3093_v35, 0  ;;  %v869_v54 = vsel %vm4090_vm14, 0, %v867_v62  ;;  %v973_v55 = vsel %vm4118_vm2, 0, %v971_v19 }
 0x143   : > { %v1076_v47 = vsel %vm4129_vm3, %v3789_v61, %v1073_v63  ;;  %v4147_v13 = vadd.f32 48.0, %v375_v41  ;;  %v643_v60 = vsel %vm3094_vm4, 0, %v3093_v35  ;;  %v534_v5 = vsub.s32 0, %v4136_v16 }
 0x144   : > { %v628_v2 = vadd.s32 %v3999_v7, %v3996_v58  ;;  %v644_v44 = vsub.s32 32, %v643_v60  ;;  %v648_v9 = vsub.s32 4294967266, %v643_v60  ;;  %v658_v34 = vsub.s32 4, %v4057_v45 }
 0x145   : > { %v972_v26 = vsel %vm4118_vm2, %v3708_v56, %v969_v52  ;;  %3287 = vsinq.f32 %v1076_v47  ;;  %v3088_v1 = vmin.u32 %v534_v5, %v4136_v16  ;;  %v873_v20 = vadd.s32 3, %v869_v54 }
 0x146   : > { %v645_v42 = vshll.u32 %v4081_v6, %v643_v60  ;;  %v646_v23 = vshrl.u32 %v628_v2, %v644_v44  ;;  %v649_v0 = vadd.s32 127, %v648_v9  ;;  %v1074_v58 = vsub.s32 4, %v3929_v30  ;;  %v3280_v7 = vpop.eup %3279 }
 0x147   : > { %v4161_v3 = vadd.s32 3, %v973_v55  ;;  %3289 = vcosq.f32 %v1076_v47  ;;  %vm574_vm5 = vcmp.lt.s32.totalorder %v3887_v43, 0  ;;  %v536_v39 = vclz %v3088_v1  ;;  %v3282_v36 = vpop.eup %3281 }
 0x148   : > { %3291 = vcosq.f32 %v972_v26  ;;  %v647_v4 = vor.u32 %v646_v23, %v645_v42  ;;  %v650_v46 = vshll.u32 %v649_v0, 23  ;;  %v659_v21 = vsel %vm574_vm5, %v658_v34, %v4057_v45  ;;  %v3284_v6 = vpop.eup %3283 }
 0x149   : > { %3293 = vsinq.f32 %v972_v26  ;;  %v5262_v40 = vand.u32 2147483647, %v3887_v43  ;;  %v3089_v17 = vadd.s32 4294967294, %v536_v39  ;;  %v1075_v24 = vsel %vm990_vm1, %v1074_v58, %v3929_v30  ;;  %v3286_v51 = vpop.eup %3285 }
 0x14a   : > { %v651_v49 = vor.u32 4788187, %v650_v46  ;;  %v874_v50 = vand.u32 3, %v873_v20  ;;  %v877_v41 = vxor.u32 2147483648, %v3280_v7  ;;  %v1077_v45 = vsel %vm4129_vm3, 0, %v1075_v24 }
 0x14b   : > { %vm4169_vm6 = vcmp.le.f32.partialorder %v5262_v40, 0.7853982  ;;  %v524_v63 = vadd.s32 %v4044_v18, %v4042_v27  ;;  %vm3090_vm7 = vcmp.lt.s32.totalorder %v3089_v17, 0  ;;  %v880_v25 = vxor.u32 2147483648, %v3282_v36 }
 0x14c   : > { %v661_v22 = vsel %vm4169_vm6, 0, %v659_v21  ;;  %v652_v62 = vand.u32 2147483647, %v651_v49  ;;  %v654_v8 = vcvt.s32.f32 %v647_v4  ;;  %v539_v12 = vsel %vm3090_vm7, 0, %v3089_v17 }
 0x14d   : > { %v1081_v19 = vadd.s32 3, %v1077_v45  ;;  %v540_v30 = vsub.s32 32, %v539_v12  ;;  %v544_v35 = vsub.s32 4294967266, %v539_v12  ;;  %v773_v37 = vxor.u32 2147483648, %v3286_v51 }
 0x14e   : > { %v776_v52 = vxor.u32 2147483648, %v3284_v6  ;;  %v655_v47 = vmul.f32 %v654_v8, %v652_v62  ;;  %vm876_vm8 = vcmp.eq.s32.totalorder %v874_v50, 0  ;;  %vm879_vm9 = vcmp.eq.s32.totalorder %v874_v50, 2 }
 0x14f   : > { %vm772_vm10 = vcmp.eq.s32.totalorder %v4125_v28, 0  ;;  %v3288_v48 = vpop.eup %3287  ;;  %vm470_vm11 = vcmp.lt.s32.totalorder %v3703_v53, 0  ;;  %v541_v27 = vshll.u32 %v4136_v16, %v539_v12  ;;  %v542_v18 = vshrl.u32 %v524_v63, %v540_v30 }
 0x150   : > { %v545_v54 = vadd.s32 127, %v544_v35  ;;  %v878_v55 = vsel %vm876_vm8, %v3282_v36, %v877_v41  ;;  %v656_v60 = vxor.u32 2147483648, %v655_v47  ;;  %v881_v5 = vsel %vm879_vm9, %v880_v25, %v3280_v7 }
 0x151   : > { %vm775_vm12 = vcmp.eq.s32.totalorder %v4125_v28, 2  ;;  %v1082_v2 = vand.u32 3, %v1081_v19  ;;  %v3290_v44 = vpop.eup %3289  ;;  %v543_v9 = vor.u32 %v542_v18, %v541_v27  ;;  %v774_v26 = vsel %vm772_vm10, %v3284_v6, %v773_v37 }
 0x152   : > { %v546_v34 = vshll.u32 %v545_v54, 23  ;;  %v777_v1 = vsel %vm775_vm12, %v776_v52, %v3286_v51  ;;  %v3292_v20 = vpop.eup %3291  ;;  %v657_v42 = vsel %vm574_vm5, %v656_v60, %v655_v47  ;;  %vm875_vm13 = vcmp.lt.s32.totalorder %v874_v50, 2 }
 0x153   : > { %vm771_vm14 = vcmp.lt.s32.totalorder %v4125_v28, 2  ;;  %v1085_v16 = vxor.u32 2147483648, %v3288_v48  ;;  %v3294_v23 = vpop.eup %3293  ;;  %v660_v0 = vsel %vm4169_vm6, %v3887_v43, %v657_v42  ;;  %v554_v7 = vsub.s32 4, %v4105_v57 }
 0x154   : > { %v547_v58 = vor.u32 4788187, %v546_v34  ;;  %v882_v39 = vsel %vm875_vm13, %v878_v55, %v881_v5  ;;  %3295 = vcosq.f32 %v660_v0  ;;  %v778_v36 = vsel %vm771_vm14, %v774_v26, %v777_v1 }
 0x155   : > { %vm1084_vm15 = vcmp.eq.s32.totalorder %v1082_v2, 0  ;;  %v1088_v4 = vxor.u32 2147483648, %v3290_v44  ;;  %3297 = vsinq.f32 %v660_v0  ;;  %v550_v21 = vcvt.s32.f32 %v543_v9 }
 0x156   : > { %v548_v46 = vand.u32 2147483647, %v547_v58  ;;  %vm1087_vm1 = vcmp.eq.s32.totalorder %v1082_v2, 2  ;;  %v665_v6 = vadd.s32 3, %v661_v22  ;;  %vm872_vm2 = vweird.f32 %v3683_v32 }
 0x157   : > { %v1086_v28 = vsel %vm1084_vm15, %v3290_v44, %v1085_v16  ;;  %v1089_v40 = vsel %vm1087_vm1, %v1088_v4, %v3288_v48  ;;  %v377_v38 = vmul.f32 %v4147_v13, %v3652_v11  ;;  %v4196_v24 = vsel %vm872_vm2, nan, %v882_v39 }
 0x158   : > { %v551_v17 = vmul.f32 %v550_v21, %v548_v46  ;;  %vm768_vm3 = vweird.f32 %v3680_v31  ;;  %v978_v51 = vand.u32 3, %v4161_v3  ;;  %v555_v49 = vsel %vm470_vm11, %v554_v7, %v4105_v57 }
 0x159   : > { %v4203_v50 = vsel %vm768_vm3, nan, %v778_v36  ;;  %vm1083_vm4 = vcmp.lt.s32.totalorder %v1082_v2, 2  ;;  %v981_v45 = vxor.u32 2147483648, %v3294_v23  ;;  %v984_v22 = vxor.u32 2147483648, %v3292_v20 }
 0x15a   : > { %v552_v32 = vxor.u32 2147483648, %v551_v17  ;;  %v1090_v41 = vsel %vm1083_vm4, %v1086_v28, %v1089_v40  ;;  %v666_v63 = vand.u32 3, %v665_v6  ;;  %v5265_v13 = vand.u32 2147483647, %v3703_v53 }
 0x15b   : > { %v4213_v31 = vadd.f32 %v4196_v24, %v4196_v24  ;;  %v1107_v57 = vrot.slane %v4196_v24, 7  ;;  %v4222_v8 = vadd.f32 %v4203_v50, %v4203_v50  ;;  %vm1080_vm6 = vweird.f32 %v3789_v61 }
 0x15c   : > { %vm4207_vm5 = vcmp.le.f32.partialorder %v5265_v13, 0.7853982  ;;  %v553_v3 = vsel %vm470_vm11, %v552_v32, %v551_v17  ;;  %v4228_v19 = vsel %vm1080_vm6, nan, %v1090_v41  ;;  %vm980_vm7 = vcmp.eq.s32.totalorder %v978_v51, 0 }
 0x15d   : > { %v557_v62 = vsel %vm4207_vm5, 0, %v555_v49  ;;  %v556_v12 = vsel %vm4207_vm5, %v3703_v53, %v553_v3  ;;  %vm983_vm8 = vcmp.eq.s32.totalorder %v978_v51, 2  ;;  %v1106_v30 = vrot.slane %v4203_v50, 7 }
 0x15e   : > { %3299 = vcosq.f32 %v556_v12  ;;  %v982_v35 = vsel %vm980_vm7, %v3292_v20, %v981_v45  ;;  %v985_v37 = vsel %vm983_vm8, %v984_v22, %v3294_v23  ;;  %v3296_v52 = vpop.eup %3295  ;;  %v378_v47 = vadd.f32 -28.0, %v377_v38 }
 0x15f   : > { %vm671_vm9 = vcmp.eq.s32.totalorder %v666_v63, 2  ;;  %3301 = vsinq.f32 %v556_v12  ;;  %v1119_v61 = vmul.f32 %v1107_v57, %v4213_v31  ;;  %v3298_v48 = vpop.eup %3297  ;;  %v672_v27 = vxor.u32 2147483648, %v3296_v52 }
 0x160   : > { %v4236_v18 = vadd.f32 %v4228_v19, %v4228_v19  ;;  %v1109_v54 = vrot.slane %v4228_v19, 7  ;;  %vm979_vm10 = vcmp.lt.s32.totalorder %v978_v51, 2  ;;  %v669_v55 = vxor.u32 2147483648, %v3298_v48 }
 0x161   : > { %v561_v60 = vadd.s32 3, %v557_v62  ;;  %v1125_v5 = vrot.slane %v4196_v24, 6  ;;  %v986_v2 = vsel %vm979_vm10, %v982_v35, %v985_v37  ;;  %vm664_vm11 = vweird.f32 %v3887_v43 }
 0x162   : > { %vm668_vm12 = vcmp.eq.s32.totalorder %v666_v63, 0  ;;  %v673_v44 = vsel %vm671_vm9, %v672_v27, %v3298_v48  ;;  %v1118_v9 = vmul.f32 %v1106_v30, %v4222_v8  ;;  %vm667_vm13 = vcmp.lt.s32.totalorder %v666_v63, 2 }
 0x163   : > { %v670_v34 = vsel %vm668_vm12, %v3296_v52, %v669_v55  ;;  %v4244_v26 = vsub.f32 %v1119_v61, %v1125_v5  ;;  %vm976_vm14 = vweird.f32 %v3708_v56  ;;  %v1124_v20 = vrot.slane %v4203_v50, 6 }
 0x164   : > { %v674_v1 = vsel %vm667_vm13, %v670_v34, %v673_v44  ;;  %v1121_v42 = vmul.f32 %v1109_v54, %v4236_v18  ;;  %v4249_v16 = vsel %vm976_vm14, nan, %v986_v2  ;;  %v379_v43 = vmul.f32 %v378_v47, %v4134_v59 }
 0x165   : > { %v675_v23 = vsel %vm664_vm11, nan, %v674_v1  ;;  %v562_v0 = vand.u32 3, %v561_v60  ;;  %v4252_v39 = vsub.f32 %v1118_v9, %v1124_v20  ;;  %v1127_v36 = vrot.slane %v4228_v19, 6 }
 0x166   : > { %v1093_v58 = vadd.f32 %v675_v23, %v675_v23  ;;  %v1105_v7 = vrot.slane %v675_v23, 7  ;;  %v1143_v56 = vmul.f32 %v4244_v26, %v4213_v31  ;;  %v4259_v4 = vadd.f32 %v4249_v16, %v4249_v16 }
 0x167   : > { %v1108_v46 = vrot.slane %v4249_v16, 7  ;;  %v1123_v59 = vrot.slane %v675_v23, 6  ;;  %v4262_v28 = vsub.f32 %v1121_v42, %v1127_v36  ;;  %v380_v38 = vadd.f32 %v4153_v15, %v379_v43 }
 0x168   : > { %v3300_v21 = vpop.eup %3299  ;;  %v1117_v6 = vmul.f32 %v1105_v7, %v1093_v58  ;;  %vm567_vm15 = vcmp.eq.s32.totalorder %v562_v0, 2  ;;  %v1142_v32 = vmul.f32 %v4252_v39, %v4222_v8  ;;  %vm564_vm1 = vcmp.eq.s32.totalorder %v562_v0, 0 }
 0x169   : > { %v3302_v40 = vpop.eup %3301  ;;  %v568_v17 = vxor.u32 2147483648, %v3300_v21  ;;  %v1149_v45 = vsub.f32 %v1143_v56, %v1107_v57  ;;  %v1120_v22 = vmul.f32 %v1108_v46, %v4259_v4  ;;  %vm563_vm2 = vcmp.lt.s32.totalorder %v562_v0, 2 }
 0x16a   : > { %v1135_v51 = vsub.f32 %v1117_v6, %v1123_v59  ;;  %v565_v49 = vxor.u32 2147483648, %v3302_v40  ;;  %v1145_v15 = vmul.f32 %v4262_v28, %v4236_v18  ;;  %vm372_vm3 = vcmp.lt.f32.partialorder %v3652_v11, 1.0 }
 0x16b   : > { %v569_v41 = vsel %vm567_vm15, %v568_v17, %v3302_v40  ;;  %vm560_vm4 = vweird.f32 %v3703_v53  ;;  %v1126_v3 = vrot.slane %v4249_v16, 6  ;;  %v1148_v57 = vsub.f32 %v1142_v32, %v1106_v30 }
 0x16c   : > { %v1141_v63 = vmul.f32 %v1135_v51, %v1093_v58  ;;  %v566_v13 = vsel %vm564_vm1, %v3300_v21, %v565_v49  ;;  %v1155_v52 = vmul.f32 %v1149_v45, %v4213_v31  ;;  %v4280_v61 = vsel %vm372_vm3, %v380_v38, 0.0 }
 0x16d   : > { %v570_v25 = vsel %vm563_vm2, %v566_v13, %v569_v41  ;;  %v4278_v47 = vsub.f32 %v1120_v22, %v1126_v3  ;;  %v1151_v11 = vsub.f32 %v1145_v15, %v1109_v54  ;;  %vm1206_vm5 = vcmask 1040384  }
 0x16e   : > { %v1147_v62 = vsub.f32 %v1141_v63, %v1105_v7  ;;  %v571_v12 = vsel %vm560_vm4, nan, %v570_v25  ;;  %v1154_v60 = vmul.f32 %v1148_v57, %v4222_v8  ;;  %v1221_v5 = vrot.slane %v4280_v61, %v3784_v33 }
 0x16f   : > { %v1092_v35 = vadd.f32 %v571_v12, %v571_v12  ;;  %v1104_v37 = vrot.slane %v571_v12, 7  ;;  %v1122_v53 = vrot.slane %v571_v12, 6  ;;  %v1161_v2 = vsub.f32 %v1155_v52, %v4244_v26 }
 0x170   : > { %v1153_v48 = vmul.f32 %v1147_v62, %v1093_v58  ;;  %v1144_v31 = vmul.f32 %v4278_v47, %v4259_v4  ;;  %v1171_v44 = vrot.slane %v1147_v62, 7  ;;  %v1201_v34 = vsel %vm461_vm0, %v675_v23, %v1135_v51 }
 0x171   : > { %v1116_v27 = vmul.f32 %v1104_v37, %v1092_v35  ;;  %v1157_v54 = vmul.f32 %v1151_v11, %v4236_v18  ;;  %vm1277_vm6 = vcmask 1041408   ;;  %v1160_v8 = vsub.f32 %v1154_v60, %v4252_v39 }
 0x172   : > { %v1159_v55 = vsub.f32 %v1153_v48, %v1135_v51  ;;  %v1245_v42 = vmul.f32 %v1221_v5, %v1201_v34  ;;  %v1150_v58 = vsub.f32 %v1144_v31, %v1108_v46  ;;  %vm3461_vm7 = vmmov 1  }
 0x173   : > { %v1134_v30 = vsub.f32 %v1116_v27, %v1122_v53  ;;  %vm4292_vm8 = vmpackc.low %vm1277_vm6, %vm3461_vm7  ;;  %v1191_v36 = vrot.slane %v1161_v2, 6  ;;  %v1163_v23 = vsub.f32 %v1157_v54, %v4262_v28  ;;  %v1173_v21 = vrot.slane %v1149_v45, 7 }
 0x174   : > { %v1189_v9 = vrot.slane %v1159_v55, 6  ;;  %v1190_v59 = vrot.slane %v1160_v8, 6  ;;  %v1156_v40 = vmul.f32 %v1150_v58, %v4259_v4  ;;  %v1217_v46 = vrot.slane %v4280_v61, %v3659_v14 }
 0x175   : > { %v1140_v1 = vmul.f32 %v1134_v30, %v1092_v35  ;;  %v1210_v38 = vsel %vm1206_vm5, %v1173_v21, %v1191_v36  ;;  %v1229_v17 = vrot.slane %v4280_v61, %v3650_v10  ;;  %v1193_v51 = vrot.slane %v1163_v23, 6 }
 0x176   : > { %v1208_v20 = vsel %vm1206_vm5, %v1171_v44, %v1189_v9  ;;  %v1200_v41 = vsel %vm461_vm0, %v571_v12, %v1134_v30  ;;  %v1172_v45 = vrot.slane %v1148_v57, 7  ;;  %v1203_v22 = vsel %vm461_vm0, %v4196_v24, %v4244_v26  ;;  %v5271_v26 = vld [vmem:[#allocation8_spill] sm:$0xff]  ;;  %v1257_v44 = vld [vmem:[%s5161_s4 + $0x8] sm:$0xff]  ;;  %v5273_v9 = vld [vmem:[#allocation11_spill] sm:$0xff] }
 0x177   : > { %v1251_v43 = vmul.f32 %v1221_v5, %v1208_v20  ;;  %v1146_v0 = vsub.f32 %v1140_v1, %v1104_v37  ;;  %v1175_v63 = vrot.slane %v1151_v11, 7  ;;  %v1253_v13 = vmul.f32 %v1229_v17, %v1210_v38 }
 0x178   : > { %v1209_v15 = vsel %vm1206_vm5, %v1172_v45, %v1190_v59  ;;  %v1162_v25 = vsub.f32 %v1156_v40, %v4278_v47  ;;  %v1244_v3 = vmul.f32 %v1217_v46, %v1200_v41  ;;  %v1247_v57 = vmul.f32 %v1229_v17, %v1203_v22 }
 0x179   : > { %v3155_v56 = vpack.c.bf16 %v1251_v43, %v1245_v42  ;;  %v1152_v18 = vmul.f32 %v1146_v0, %v1092_v35  ;;  %v1170_v49 = vrot.slane %v1146_v0, 7  ;;  %v5270_v35 = vld [vmem:[#allocation9_spill] sm:$0xff]  ;;  %v1212_v12 = vsel %vm1206_vm5, %v1175_v63, %v1193_v51 }
 0x17a   : > { %v1225_v37 = vrot.slane %v4280_v61, %v5270_v35  ;;  %v1202_v24 = vsel %vm461_vm0, %v4203_v50, %v4252_v39  ;;  %v5272_v52 = vsub.s32 5, %v5271_v26  ;;  %v1205_v53 = vsel %vm461_vm0, %v4228_v19, %v4262_v28  ;;  %v1256_v50 = vld [vmem:[%s5161_s4] sm:$0xff] }
 0x17b   : > { %3157 = vmatprep.subr.msk.bf16.mxu0 %vm4292_vm8, %v3155_v56  ;;  %v1158_v6 = vsub.f32 %v1152_v18, %v1134_v30  ;;  %v3161_v55 = vpack.c.bf16 %v1253_v13, %v1247_v57  ;;  %v1192_v5 = vrot.slane %v1162_v25, 6  ;;  %vm1270_vm9 = vcmask 80896  }
 0x17c   : > { %v1237_v48 = vrot.slane %v4280_v61, %v5272_v52  ;;  %v1252_v27 = vmul.f32 %v1225_v37, %v1209_v15  ;;  %v1246_v39 = vmul.f32 %v1225_v37, %v1202_v24  ;;  %v1174_v2 = vrot.slane %v1150_v58, 7 }
 0x17d   : > { %v1188_v32 = vrot.slane %v1158_v6, 6  ;;  %v1233_v34 = vrot.slane %v4280_v61, %v5273_v9  ;;  %v1204_v54 = vsel %vm461_vm0, %v4249_v16, %v4278_v47  ;;  %vm1646_vm10 = vcmask 130048  }
 0x17e   : > { %v1255_v60 = vmul.f32 %v1237_v48, %v1212_v12  ;;  %v1249_v30 = vmul.f32 %v1237_v48, %v1205_v53  ;;  %v3164_v31 = vpack.c.bf16 %v1252_v27, %v1246_v39  ;;  %v1211_v28 = vsel %vm1206_vm5, %v1174_v2, %v1192_v5 }
 0x17f   : > { %v1207_v4 = vsel %vm1206_vm5, %v1170_v49, %v1188_v32  ;;  %v1254_v1 = vmul.f32 %v1233_v34, %v1211_v28  ;;  %v1248_v20 = vmul.f32 %v1233_v34, %v1204_v54  ;;  %vm2226_vm11 = vcmask 1042432  }
 0x180   : > { %v1250_v62 = vmul.f32 %v1217_v46, %v1207_v4  ;;  %v3167_v19 = vpack.c.bf16 %v1255_v60, %v1249_v30  ;;  %vm2671_vm12 = vcmask 1044480   ;;  %vm2948_vm13 = vcmask 1043456  }
 0x181   : > { %v3170_v8 = vpack.c.bf16 %v1254_v1, %v1248_v20 }
 0x182   : > { %v3158_v11 = vpack.c.bf16 %v1250_v62, %v1244_v3 }
 0x184   : > { %3160 = vmatpush1.bf16.msk.msra.mxu0 %vm4292_vm8, %v3158_v11 }
 0x185   : > { %3163 = vmatprep.subr.msk.bf16.mxu0 %vm4292_vm8, %v3161_v55 }
 0x187   : > { %3113 = vmatmul.mubr.msk.f32.vlgmr.msra.gmra.mrb[0].mxu0 %vm1270_vm9, %v1256_v50 }
 0x188   : > { %3166 = vmatpush1.bf16.msk.msra.mxu0 %vm4292_vm8, %v3164_v31  ;;  %1366 = vmatprep.mubr.f32.mxu0 %v3460_v29 }
 0x189   : > { %3169 = vmatprep.subr.msk.bf16.mxu0 %vm4292_vm8, %v3167_v19 }
 0x18b   : > { %3114 = vmatmul.mubr.msk.f32.gmra.mrb[2].mxu0 %vm1270_vm9, %v1257_v44 }
 0x18c   : > { %1437 = vmatprep.mubr.f32.mxu0 %v3460_v29 }
 0x18f   : > { %3117 = vmatmul.mubr.msk.f32.vlgmr.msra.gmra.mrb[4].mxu0 %vm1270_vm9, %v1256_v50 }
 0x190   : > { %3172 = vmatpush1.bf16.msk.msra.mxu0 %vm4292_vm8, %v3170_v8  ;;  %1443 = vmatprep.mubr.f32.mxu0 %v3460_v29 }
 0x192   : > { %v1263_v16 = vpop.permute.xlu1 %1262 }
 0x193   : > { %3118 = vmatmul.mubr.msk.f32.gmra.mrb[6].mxu0 %vm1270_vm9, %v1257_v44 }
 0x194   : > { %1514 = vmatprep.mubr.f32.mxu0 %v3460_v29 }
 0x196   : > { %v1268_v7 = vpop.permute.xlu1 %1267 }
 0x197   : > { %3121 = vmatmul.mubr.msk.f32.vlgmr.msra.gmra.mrb[8].mxu0 %vm1270_vm9, %v1256_v50 }
 0x198   : > { %1520 = vmatprep.mubr.f32.mxu0 %v3460_v29 }
 0x19b   : > { %3122 = vmatmul.mubr.msk.f32.gmra.mrb[10].mxu0 %vm1270_vm9, %v1257_v44 }
 0x19c   : > { %1821 = vmatprep.mubr.f32.mxu0 %v3460_v29 }
 0x25a   : > { %v1362_v47 = vpop.f32.mrb[0].mxu0 }
 0x25b   : > { %v4358_v61 = vadd.f32 %v1362_v47, %v1263_v16  ;;  %v1364_v42 = vpop.f32.mrb[1].mxu0 }
 0x25c   : > { %v4360_v43 = vadd.f32 %v1364_v42, %v1263_v16 }
 0x25d   : > { %v3123_v0 = vmul.f32 -1.442695, %v4358_v61 }
 0x25e   : > { %v3124_v58 = vmul.f32 -1.442695, %v4360_v43  ;;  %v1368_v36 = vpop.f32.mrb[2].mxu0 }
 0x25f   : > { %3303 = vpow2.f32 %v3123_v0  ;;  %v4364_v23 = vadd.f32 %v1368_v36, %v1268_v7  ;;  %v1370_v56 = vpop.f32.mrb[3].mxu0 }
 0x260   : > { %3305 = vpow2.f32 %v3124_v58  ;;  %v4366_v18 = vadd.f32 %v1370_v56, %v1268_v7 }
 0x261   : > { %v3129_v21 = vmul.f32 -1.442695, %v4364_v23 }
 0x262   : > { %v3130_v6 = vmul.f32 -1.442695, %v4366_v18  ;;  %v1439_v59 = vpop.f32.mrb[4].mxu0 }
 0x263   : > { %3307 = vpow2.f32 %v3129_v21  ;;  %v4370_v40 = vadd.f32 %v1439_v59, %v1263_v16  ;;  %v1441_v46 = vpop.f32.mrb[5].mxu0 }
 0x264   : > { %3309 = vpow2.f32 %v3130_v6  ;;  %v4372_v38 = vadd.f32 %v1441_v46, %v1263_v16 }
 0x265   : > { %v3125_v17 = vmul.f32 -1.442695, %v4370_v40 }
 0x266   : > { %v3126_v51 = vmul.f32 -1.442695, %v4372_v38  ;;  %v1445_v49 = vpop.f32.mrb[6].mxu0 }
 0x267   : > { %3311 = vpow2.f32 %v3125_v17  ;;  %v4376_v32 = vadd.f32 %v1445_v49, %v1268_v7  ;;  %v1447_v41 = vpop.f32.mrb[7].mxu0 }
 0x268   : > { %3313 = vpow2.f32 %v3126_v51  ;;  %v4378_v45 = vadd.f32 %v1447_v41, %v1268_v7 }
 0x269   : > { %v3304_v22 = vpop.eup %3303  ;;  %v3131_v63 = vmul.f32 -1.442695, %v4376_v32 }
 0x26a   : > { %v3306_v4 = vpop.eup %3305  ;;  %v1563_v13 = vadd.f32 1.0, %v3304_v22  ;;  %v3132_v15 = vmul.f32 -1.442695, %v4378_v45  ;;  %v1516_v25 = vpop.f32.mrb[8].mxu0 }
 0x26b   : > { %v1564_v3 = vadd.f32 1.0, %v3306_v4  ;;  %3315 = vpow2.f32 %v3131_v63  ;;  %v4382_v62 = vadd.f32 %v1516_v25, %v1263_v16  ;;  %v1518_v37 = vpop.f32.mrb[9].mxu0 }
 0x26c   : > { %3317 = vrcp.f32 %v1563_v13  ;;  %v4384_v12 = vadd.f32 %v1518_v37, %v1263_v16  ;;  %v1612_v13 = vld [vmem:[%s5163_s6 + $0x8] sm:$0xff] }
 0x26d   : > { %v3308_v57 = vpop.eup %3307  ;;  %3319 = vrcp.f32 %v1564_v3  ;;  %v3127_v24 = vmul.f32 -1.442695, %v4382_v62 }
 0x26e   : > { %v3310_v52 = vpop.eup %3309  ;;  %v1569_v48 = vadd.f32 1.0, %v3308_v57  ;;  %3321 = vpow2.f32 %v3132_v15  ;;  %v3128_v11 = vmul.f32 -1.442695, %v4384_v12  ;;  %v1522_v27 = vpop.f32.mrb[10].mxu0 }
 0x26f   : > { %v1570_v53 = vadd.f32 1.0, %v3310_v52  ;;  %3323 = vpow2.f32 %v3127_v24  ;;  %v4388_v55 = vadd.f32 %v1522_v27, %v1268_v7  ;;  %v1524_v60 = vpop.f32.mrb[11].mxu0 }
 0x270   : > { %3325 = vrcp.f32 %v1569_v48  ;;  %v4390_v5 = vadd.f32 %v1524_v60, %v1268_v7  ;;  %v1614_v48 = vld [vmem:[%s5163_s6 + $0x18] sm:$0xff]  ;;  %v4457_v60 = vld [vmem:[%s4453_s26 + $0x8] sm:$0xff] }
 0x271   : > { %v3312_v50 = vpop.eup %3311  ;;  %3327 = vrcp.f32 %v1570_v53  ;;  %v3133_v39 = vmul.f32 -1.442695, %v4388_v55  ;;  %v1615_v53 = vld [vmem:[%s5163_s6 + $0x20] sm:$0xf] }
 0x272   : > { %v3314_v30 = vpop.eup %3313  ;;  %v1565_v2 = vadd.f32 1.0, %v3312_v50  ;;  %3329 = vpow2.f32 %v3128_v11  ;;  %v3134_v31 = vmul.f32 -1.442695, %v4390_v5 }
 0x273   : > { %3331 = vpow2.f32 %v3133_v39  ;;  %v1566_v28 = vadd.f32 1.0, %v3314_v30  ;;  %v2200_v30 = vcombine.high %v4457_v60, %v4457_v60 }
 0x274   : > { %3333 = vrcp.f32 %v1565_v2  ;;  %v4466_v2 = vrot.slane %v4457_v60, 1 }
 0x275   : > { %v3316_v19 = vpop.eup %3315  ;;  %3335 = vpow2.f32 %v3134_v31  ;;  %v2216_v31 = vrot.slane %v4457_v60, 6 }
 0x276   : > { %v3318_v44 = vpop.eup %3317  ;;  %v1571_v34 = vadd.f32 1.0, %v3316_v19  ;;  %5274 = vst [vmem:[#allocation9_spill] sm:$0xff] %v4466_v2 }
 0x277   : > { %v3320_v54 = vpop.eup %3319  ;;  %v1599_v0 = vmul.f32 %v3318_v44, %v4358_v61 }
 0x278   : > { %v3322_v1 = vpop.eup %3321  ;;  %3337 = vrcp.f32 %v1571_v34  ;;  %v1600_v36 = vmul.f32 %v3320_v54, %v4360_v43  ;;  %v4476_v34 = vrot.slane %v2200_v30, 1  ;;  %v2217_v54 = vrot.slane %v2200_v30, 6 }
 0x279   : > { %v3324_v20 = vpop.eup %3323  ;;  %3339 = vrcp.f32 %v1566_v28  ;;  %v1572_v8 = vadd.f32 1.0, %v3322_v1  ;;  %v4472_v28 = vld [vmem:[%s3616_s13] sm:$0xff]  ;;  %v4479_v1 = vld [vmem:[%s3616_s13 + $0x8] sm:$0xff] }
 0x27a   : > { %v3326_v16 = vpop.eup %3325  ;;  %v1567_v47 = vadd.f32 1.0, %v3324_v20  ;;  %5275 = vst [vmem:[#allocation8_spill] sm:$0xff] %v4476_v34 }
 0x27b   : > { %v3328_v42 = vpop.eup %3327  ;;  %v1605_v58 = vmul.f32 %v3326_v16, %v4364_v23  ;;  %3341 = vrcp.f32 %v1572_v8  ;;  %v1611_v23 = vld [vmem:[%s5163_s6] sm:$0xff] }
 0x27c   : > { %v3330_v7 = vpop.eup %3329  ;;  %v1606_v56 = vmul.f32 %v3328_v42, %v4366_v18  ;;  %3343 = vrcp.f32 %v1567_v47  ;;  %v2229_v47 = vsel %vm2226_vm11, %v4466_v2, %v2216_v31  ;;  %v4487_v42 = vrot.slane %v4472_v28, %v3659_v14 }
 0x27d   : > { %v3332_v21 = vpop.eup %3331  ;;  %v1568_v6 = vadd.f32 1.0, %v3330_v7  ;;  %v3175_v59 = vpack.c.bf16 %v1605_v58, %v1599_v0  ;;  %v4491_v0 = vrot.slane %v4472_v28, %v3784_v33  ;;  %v4494_v58 = vld [vmem:[%s3616_s13 + $0x30] sm:$0x3] }
 0x27e   : > { %v1573_v46 = vadd.f32 1.0, %v3332_v21  ;;  %v3173_v17 = vpack.c.bf16 %v1606_v56, %v1600_v36  ;;  %v3334_v51 = vpop.eup %3333  ;;  %v4498_v36 = vrot.slane %v4479_v1, %v3659_v14  ;;  %v4502_v56 = vrot.slane %v4479_v1, %v3784_v33 }
 0x27f   : > { %v3336_v49 = vpop.eup %3335  ;;  %v1601_v41 = vmul.f32 %v3334_v51, %v4370_v40  ;;  %v4506_v21 = vrot.slane %v4472_v28, %v5270_v35 }
 0x280   : > { %3345 = vrcp.f32 %v1573_v46  ;;  %3174 = vmatprep.subr.bf16.mxu1 %v3173_v17  ;;  %v1574_v61 = vadd.f32 1.0, %v3336_v49  ;;  %v2230_v46 = vsel %vm2226_vm11, %v4476_v34, %v2217_v54  ;;  %v4518_v17 = vrot.slane %v4472_v28, %v3650_v10 }
 0x281   : > { %3347 = vrcp.f32 %v1568_v6  ;;  %3176 = vmatpush1.bf16.msra.mxu1 %v3175_v59  ;;  %v4509_v6 = vld [vmem:[%s3616_s13 + $0x10] sm:$0xff]  ;;  %v4525_v49 = vrot.slane %v4479_v1, %v5270_v35 }
 0x282   : > { %v3338_v43 = vpop.eup %3337  ;;  %3349 = vrcp.f32 %v1574_v61  ;;  %5276 = vst [vmem:[#allocation11_spill] sm:$0xff] %v4509_v6  ;;  %v4512_v59 = vld [vmem:[%s4453_s26 + $0x10] sm:$0xff]  ;;  %v4528_v61 = vld [vmem:[%s3616_s13 + $0x38] sm:$0x3] }
 0x283   : > { %v3340_v18 = vpop.eup %3339  ;;  %v1607_v22 = vmul.f32 %v3338_v43, %v4376_v32  ;;  %v1613_v32 = vld [vmem:[%s5163_s6 + $0x10] sm:$0xff]  ;;  %5277 = vst [vmem:[#allocation12_spill] sm:$0xff] %v4528_v61  ;;  %v4532_v43 = vrot.slane %v4479_v1, %v3650_v10 }
 0x284   : > { %3135 = vmatmul.mubr.msk.f32.vlgmr.msra.gmra.mrb[0].mxu1 %vm1646_vm10, %v1611_v23  ;;  %v1602_v15 = vmul.f32 %v3340_v18, %v4372_v38 }
 0x285   : > { %v3342_v63 = vpop.eup %3341  ;;  %v3179_v4 = vpack.c.bf16 %v1607_v22, %v1601_v41  ;;  %1732 = vmatprep.mubr.f32.mxu1 %v3460_v29 }
 0x286   : > { %v1608_v25 = vmul.f32 %v3342_v63, %v4378_v45  ;;  %v3344_v3 = vpop.eup %3343  ;;  %v4540_v63 = vld [vmem:[%s3616_s13 + $0x40] sm:$0x3] }
 0x287   : > { %v1603_v24 = vmul.f32 %v3344_v3, %v4382_v62  ;;  %5278 = vst [vmem:[#allocation13_spill] sm:$0xff] %v4540_v63  ;;  %v2201_v3 = vcombine.high %v4512_v59, %v4512_v59 }
 0x288   : > { %3136 = vmatmul.mubr.msk.f32.gmra.mrb[2].mxu1 %vm1646_vm10, %v1612_v13  ;;  %v3177_v40 = vpack.c.bf16 %v1608_v25, %v1602_v15  ;;  %v2242_v25 = vrot.slane %v2230_v46, 4 }
 0x289   : > { %1738 = vmatprep.mubr.f32.mxu1 %v3460_v29 }
 0x28a   : > { %v3346_v37 = vpop.eup %3345  ;;  %3178 = vmatprep.subr.bf16.mxu0 %v3177_v40  ;;  %v2150_v40 = vrot.slane %v4457_v60, %v3659_v14 }
 0x28b   : > { %v3348_v57 = vpop.eup %3347  ;;  %v1609_v52 = vmul.f32 %v3346_v37, %v4388_v55  ;;  %3180 = vmatpush1.bf16.msra.mxu0 %v3179_v4  ;;  %v4544_v4 = vrot.slane %v4509_v6, %v3659_v14  ;;  %v4556_v37 = vrot.slane %v4512_v59, 1 }
 0x28c   : > { %3137 = vmatmul.mubr.msk.f32.gmra.mrb[4].mxu1 %vm1646_vm10, %v1613_v32  ;;  %v3350_v38 = vpop.eup %3349  ;;  %v1604_v11 = vmul.f32 %v3348_v57, %v4384_v12  ;;  %v1959_v12 = vld [vmem:[%s4453_s26] sm:$0xff]  ;;  %v2218_v57 = vrot.slane %v4512_v59, 6  ;;  %v4588_v31 = vrot.slane %v2150_v40, %v3659_v14 }
 0x28d   : > { %v3183_v45 = vpack.c.bf16 %v1609_v52, %v1603_v24  ;;  %1744 = vmatprep.mubr.f32.mxu1 %v3460_v29  ;;  %v1610_v27 = vmul.f32 %v3350_v38, %v4390_v5  ;;  %v2199_v55 = vcombine.high %v1959_v12, %v1959_v12  ;;  %v4459_v5 = vrot.slane %v1959_v12, 1  ;;  %5280 = vst [vmem:[#allocation15_spill] sm:$0xff] %v4556_v37 }
 0x28e   : > { %3140 = vmatmul.mubr.msk.f32.vlgmr.msra.gmra.mrb[12].mxu0 %vm1646_vm10, %v1611_v23  ;;  %v2214_v50 = vrot.slane %v1959_v12, 6  ;;  %v2142_v20 = vrot.slane %v1959_v12, %v3659_v14  ;;  %v2146_v8 = vrot.slane %v1959_v12, %v5273_v9  ;;  %v4561_v24 = vrot.slane %v4509_v6, %v3784_v33  ;;  %5283 = vst [vmem:[#allocation18_spill] sm:$0xff] %v4588_v31 }
 0x28f   : > { %1827 = vmatprep.mubr.f32.mxu0 %v3460_v29  ;;  %v3181_v62 = vpack.c.bf16 %v1610_v27, %v1604_v11  ;;  %v2215_v39 = vrot.slane %v2199_v55, 6  ;;  %v4565_v52 = vrot.slane %v4509_v6, %v5270_v35  ;;  %v4575_v11 = vrot.slane %v4509_v6, %v3650_v10 }
 0x290   : > { %3138 = vmatmul.mubr.msk.f32.gmra.mrb[6].mxu1 %vm1646_vm10, %v1614_v48  ;;  %v2227_v19 = vsel %vm2226_vm11, %v4459_v5, %v2214_v50  ;;  %v4521_v51 = vrot.slane %v2142_v20, %v3659_v14  ;;  %v4535_v18 = vrot.slane %v2146_v8, %v3659_v14  ;;  %v4581_v50 = vrot.slane %v2201_v3, 1 }
 0x291   : > { %1750 = vmatprep.mubr.f32.mxu1 %v3460_v29  ;;  %3182 = vmatprep.subr.bf16.mxu1 %v3181_v62  ;;  %v2239_v16 = vrot.slane %v2227_v19, 4 }
 0x292   : > { %3141 = vmatmul.mubr.msk.f32.gmra.mrb[14].mxu0 %vm1646_vm10, %v1612_v13  ;;  %3184 = vmatpush1.bf16.msra.mxu1 %v3183_v45  ;;  %5282 = vst [vmem:[#allocation17_spill] sm:$0xff] %v4581_v50 }
 0x293   : > { %1833 = vmatprep.mubr.f32.mxu0 %v3460_v29  ;;  %v2251_v41 = vmul.f32 %v2239_v16, %v4472_v28  ;;  %v2257_v22 = vmul.f32 %v2239_v16, %v4494_v58 }
 0x294   : > { %3139 = vmatmul.mubr.msk.f32.gmra.mrb[8].mxu1 %vm1646_vm10, %v1615_v53 }
 0x295   : > { %1916 = vmatprep.mubr.f32.mxu1 %v3460_v29  ;;  %v2269_v27 = vrot.slane %v2251_v41, 1  ;;  %v2311_v62 = vrot.slane %v2257_v22, 1  ;;  %v2287_v54 = vrot.slane %v2251_v41, 2  ;;  %v2329_v46 = vrot.slane %v2257_v22, 2  ;;  %v4597_v22 = vpop.permute.xlu0 %1633 }
 0x296   : > { %3142 = vmatmul.mubr.msk.f32.gmra.mrb[16].mxu0 %vm1646_vm10, %v1613_v32 }
 0x297   : > { %1839 = vmatprep.mubr.f32.mxu0 %v3460_v29 }
 0x298   : > { %3145 = vmatmul.mubr.msk.f32.vlgmr.msra.gmra.mrb[10].mxu1 %vm1646_vm10, %v1611_v23  ;;  %v2241_v23 = vrot.slane %v2229_v47, 4  ;;  %v2281_v47 = vadd.f32 %v2269_v27, %v2251_v41 }
 0x299   : > { %1922 = vmatprep.mubr.f32.mxu1 %v3460_v29 }
 0x29a   : > { %3143 = vmatmul.mubr.msk.f32.gmra.mrb[18].mxu0 %vm1646_vm10, %v1614_v48  ;;  %v2253_v38 = vmul.f32 %v2241_v23, %v4509_v6  ;;  %v2259_v45 = vmul.f32 %v2241_v23, %v4540_v63  ;;  %v2154_v6 = vrot.slane %v4457_v60, %v5273_v9  ;;  %v4599_v27 = vadd.f32 %v2287_v54, %v2281_v47 }
 0x29b   : > { %1845 = vmatprep.mubr.f32.mxu0 %v3460_v29 }
 0x29c   : > { %3146 = vmatmul.mubr.msk.f32.gmra.mrb[12].mxu1 %vm1646_vm10, %v1612_v13  ;;  %v4547_v13 = vld [vmem:[%s3616_s13 + $0x18] sm:$0xff]  ;;  %v2271_v20 = vrot.slane %v2253_v38, 1  ;;  %v2313_v8 = vrot.slane %v2259_v45, 1  ;;  %v2289_v2 = vrot.slane %v2253_v38, 2 }
 0x29d   : > { %1928 = vmatprep.mubr.f32.mxu1 %v3460_v29  ;;  %5279 = vst [vmem:[#allocation14_spill] sm:$0xff] %v4547_v13  ;;  %v4585_v30 = vrot.slane %v4547_v13, %v3784_v33 }
 0x29e   : > { %3144 = vmatmul.mubr.msk.f32.gmra.mrb[20].mxu0 %vm1646_vm10, %v1615_v53  ;;  %v2283_v31 = vadd.f32 %v2271_v20, %v2253_v38  ;;  %v4628_v20 = vld [vmem:[%s3616_s13 + $0x28] sm:$0xff] }
 0x29f   : > { %5286 = vst [vmem:[#allocation21_spill] sm:$0xff] %v4628_v20 }
 0x2a0   : > { %3147 = vmatmul.mubr.msk.f32.gmra.mrb[14].mxu1 %vm1646_vm10, %v1613_v32 }
 0x2a1   : > { %1934 = vmatprep.mubr.f32.mxu1 %v3460_v29 }
 0x2a4   : > { %3148 = vmatmul.mubr.msk.f32.gmra.mrb[16].mxu1 %vm1646_vm10, %v1614_v48  ;;  %v4571_v48 = vrot.slane %v4547_v13, %v3659_v14 }
 0x2a5   : > { %1940 = vmatprep.mubr.f32.mxu1 %v3460_v29  ;;  %v4461_v29 = vrot.slane %v2199_v55, 1  ;;  %v2254_v55 = vmul.f32 %v2242_v25, %v4547_v13 }
 0x2a7   : > { %v2228_v44 = vsel %vm2226_vm11, %v4461_v29, %v2215_v39  ;;  %v2219_v39 = vrot.slane %v2201_v3, 6  ;;  %v2272_v63 = vrot.slane %v2254_v55, 1 }
 0x2a8   : > { %3149 = vmatmul.mubr.msk.f32.gmra.mrb[18].mxu1 %vm1646_vm10, %v1615_v53  ;;  %v2240_v7 = vrot.slane %v2228_v44, 4  ;;  %v4578_v53 = vld [vmem:[%s3616_s13 + $0x48] sm:$0x3]  ;;  %v2231_v44 = vsel %vm2226_vm11, %v4556_v37, %v2218_v57 }
 0x2a9   : > { %5281 = vst [vmem:[#allocation16_spill] sm:$0xff] %v4578_v53  ;;  %v2260_v16 = vmul.f32 %v2242_v25, %v4578_v53  ;;  %v2243_v34 = vrot.slane %v2231_v44, 4  ;;  %v2232_v40 = vsel %vm2226_vm11, %v4581_v50, %v2219_v39  ;;  %v2331_v25 = vrot.slane %v2259_v45, 2  ;;  %v4607_v39 = vld [vmem:[%s3616_s13 + $0x20] sm:$0xff] }
 0x2aa   : > { %v2252_v15 = vmul.f32 %v2240_v7, %v4479_v1  ;;  %v2258_v32 = vmul.f32 %v2240_v7, %v4528_v61  ;;  %v2323_v7 = vadd.f32 %v2311_v62, %v2251_v41  ;;  %v2325_v61 = vadd.f32 %v2313_v8, %v2253_v38  ;;  %5284 = vst [vmem:[#allocation19_spill] sm:$0xff] %v4607_v39 }
 0x2ab   : > { %v2314_v41 = vrot.slane %v2260_v16, 1  ;;  %v2244_v60 = vrot.slane %v2232_v40, 4  ;;  %v2290_v38 = vrot.slane %v2254_v55, 2  ;;  %v4612_v45 = vmul.f32 %v2243_v34, %v4607_v39 }
 0x2ac   : > { %v2270_v12 = vrot.slane %v2252_v15, 1  ;;  %v2312_v19 = vrot.slane %v2258_v32, 1  ;;  %v2288_v23 = vrot.slane %v2252_v15, 2  ;;  %v2330_v37 = vrot.slane %v2258_v32, 2 }
 0x2ad   : > { %v4601_v62 = vadd.f32 %v2329_v46, %v2323_v7  ;;  %v2284_v32 = vadd.f32 %v2272_v63, %v2254_v55  ;;  %v4620_v44 = vrot.slane %v4547_v13, %v3650_v10  ;;  %v4630_v63 = vadd.f32 %v2289_v2, %v2283_v31 }
 0x2ae   : > { %v2282_v3 = vadd.f32 %v2270_v12, %v2252_v15  ;;  %v2324_v57 = vadd.f32 %v2312_v19, %v2252_v15  ;;  %v4604_v12 = vsub.s32 7, %v5271_v26  ;;  %v4616_v19 = vrot.slane %v4547_v13, %v5270_v35 }
 0x2af   : > { %v4623_v26 = vrot.slane %v2154_v6, %v3659_v14  ;;  %5287 = vst [vmem:[#allocation22_spill] sm:$0xff] %v4630_v63  ;;  %v4632_v8 = vadd.f32 %v2331_v25, %v2325_v61  ;;  %v2326_v47 = vadd.f32 %v2314_v41, %v2254_v55  ;;  %v2332_v7 = vrot.slane %v2260_v16, 2 }
 0x2b0   : > { %v4609_v15 = vadd.f32 %v2288_v23, %v2282_v3  ;;  %v4625_v54 = vadd.f32 %v2330_v37, %v2324_v57  ;;  %v4640_v6 = vrot.slane %v4607_v39, %v3659_v14  ;;  %v4643_v37 = vld [vmem:[%s3616_s13 + $0x50] sm:$0x3]  ;;  %v4646_v2 = vmul.f32 %v2244_v60, %v4628_v20  ;;  %v4657_v3 = vpop.permute.xlu0 %1623  ;;  %v4681_v23 = vld [vmem:[%s3616_s13 + $0x58] sm:$0x3]  ;;  %s4912_s13 = scalar_lea.vmem [#allocation5], %s3186_s18  ;;  %s3154_s18 = smul.u32 768, %s3532_s9 }
 0x2b1   : > { %5285 = vst [vmem:[#allocation20_spill] sm:$0xff] %v4623_v26  ;;  %5288 = vst [vmem:[#allocation23_spill] sm:$0xff] %v4632_v8  ;;  %v4652_v55 = vrot.slane %v4607_v39, %v3784_v33  ;;  %v4654_v31 = vadd.f32 %v2290_v38, %v2284_v32  ;;  %v2273_v16 = vrot.slane %v4612_v45, 1  ;;  %v4663_v57 = vrot.slane %v4628_v20, %v3659_v14  ;;  %s2987_s23 = sshll.u32 %s4912_s13, 4  ;;  %s5109_s23 = int_to_ptr.vmem [resolvable:$true] %s2987_s23 }
 0x2b2   : > { %5289 = vst [vmem:[#allocation24_spill] sm:$0xff] %v4640_v6  ;;  %5290 = vst [vmem:[#allocation25_spill] sm:$0xff] %v4643_v37  ;;  %v4667_v25 = vrot.slane %v4628_v20, %v3784_v33  ;;  %v2158_v41 = vrot.slane %v4512_v59, %v3659_v14  ;;  %v4675_v61 = vadd.f32 %v2332_v7, %v2326_v47  ;;  %v2274_v47 = vrot.slane %v4646_v2, 1  ;;  %s5107_s9 = scalar_lea.hbm %s5165_s8, %s3154_s18  ;;  %s3381_s15 = scalar_lea.vmem %s5109_s23, 1536 }
 0x2b3   : > { %5291 = vst [vmem:[#allocation26_spill] sm:$0xff] %v4652_v55  ;;  %5292 = vst [vmem:[#allocation27_spill] sm:$0xff] %v4654_v31  ;;  %v4678_v40 = vmul.f32 %v2243_v34, %v4643_v37  ;;  %v4685_v50 = vrot.slane %v4607_v39, %v5270_v35  ;;  %v4689_v53 = vrot.slane %v4607_v39, %v3650_v10  ;;  %v2291_v8 = vrot.slane %v4612_v45, 2  ;;  %p3382_p10 = scmp.ne.s32.totalorder %s5109_s23, %s3381_s15  ;;  %p3388_p9 = scmp.lt.s32.totalorder %s5109_s23, %s3386_s22 }
 0x2b4   : > { %5293 = vst [vmem:[#allocation28_spill] sm:$0xff] %v4657_v3  ;;  %5294 = vst [vmem:[#allocation29_spill] sm:$0xff] %v4663_v57  ;;  %v2162_v32 = vrot.slane %v4512_v59, %v5273_v9  ;;  %v2285_v37 = vadd.f32 %v2273_v16, %v4612_v45  ;;  %v4701_v39 = vrot.slane %v2158_v41, %v3659_v14  ;;  %v4718_v41 = vpop.permute.xlu0 %1628  ;;  %p3389_p0 = scmp.lt.s32.totalorder %s3387_s25, %s3381_s15 }
 0x2b5   : > { %5295 = vst [vmem:[#allocation30_spill] sm:$0xff] %v4667_v25  ;;  %5296 = vst [vmem:[#allocation31_spill] sm:$0xff] %v4675_v61  ;;  %v4705_v59 = vrot.slane %v4628_v20, %v5270_v35  ;;  %v4715_v16 = vrot.slane %v4628_v20, %v3650_v10  ;;  %p3383_p12 = pnand %p3382_p10, %p5380_p11 }
 0x2b6   : > { %5297 = vst [vmem:[#allocation32_spill] sm:$0xff] %v4681_v23  ;;  %5298 = vst [vmem:[#allocation33_spill] sm:$0xff] %v4685_v50  ;;  %v4728_v63 = vadd.f32 %v2291_v8, %v2285_v37  ;;  %p3390_p2 = por %p3389_p0, %p3388_p9 }
 0x2b7   : > { %5299 = vst [vmem:[#allocation34_spill] sm:$0xff] %v4689_v53  ;;  %5300 = vst [vmem:[#allocation35_spill] sm:$0xff] %v4701_v39  ;;  %v4708_v53 = vmul.f32 %v2244_v60, %v4681_v23  ;;  %v2286_v60 = vadd.f32 %v2274_v47, %v4646_v2  ;;  %v2292_v23 = vrot.slane %v4646_v2, 2  ;;  %p3384_p8 = pneg %p3383_p12 }
 0x2b8   : > { %5301 = vst [vmem:[#allocation36_spill] sm:$0xff] %v4705_v59  ;;  %5303 = vst [vmem:[#allocation38_spill] sm:$0xff] %v4715_v16  ;;  %v4722_v59 = vrot.slane %v2162_v32, %v3659_v14 }
 0x2b9   : > { %5302 = vst [vmem:[#allocation37_spill] sm:$0xff] %v4708_v53  ;;  %5304 = vst [vmem:[#allocation39_spill] sm:$0xff] %v4718_v41  ;;  %v2316_v32 = vrot.slane %v4708_v53, 1  ;;  %p3391_p4 = pnand %p3390_p2, %p3384_p8 }
 0x2ba   : > { %5305 = vst [vmem:[#allocation40_spill] sm:$0xff] %v4722_v59  ;;  %5306 = vst [vmem:[#allocation41_spill] sm:$0xff] %v4728_v63 }
 0x357   : > { %v1728_v46 = vpop.f32.mrb[0].mxu1 }
 0x358   : > { %v1729_v7 = vadd.f32 %v1728_v46, %v4657_v3  ;;  %v1730_v34 = vpop.f32.mrb[1].mxu1 }
 0x359   : > { %v1731_v50 = vadd.f32 %v1730_v34, %v4657_v3  ;;  %v2315_v34 = vrot.slane %v4678_v40, 1 }
 0x35a   : > { %v2016_v46 = vmul.f32 %v4491_v0, %v1729_v7  ;;  %v1986_v38 = vmul.f32 %v4487_v42, %v1729_v7 }
 0x35b   : > { %v2017_v39 = vmul.f32 %v4502_v56, %v1731_v50  ;;  %v1734_v31 = vpop.f32.mrb[2].mxu1  ;;  %v1987_v25 = vmul.f32 %v4498_v36, %v1731_v50  ;;  %v2327_v7 = vadd.f32 %v2315_v34, %v4612_v45  ;;  %v2333_v50 = vrot.slane %v4678_v40, 2 }
 0x35c   : > { %v2028_v61 = vrot.slane %v2016_v46, 4  ;;  %v1735_v20 = vadd.f32 %v1734_v31, %v4718_v41  ;;  %v1736_v16 = vpop.f32.mrb[3].mxu1 }
 0x35d   : > { %v2029_v57 = vrot.slane %v2017_v39, 4  ;;  %v1737_v13 = vadd.f32 %v1736_v16, %v4718_v41 }
 0x35e   : > { %v2040_v59 = vadd.f32 %v2028_v61, %v1986_v38  ;;  %v2070_v47 = vmul.f32 %v4506_v21, %v1735_v20  ;;  %v2106_v6 = vmul.f32 %v4518_v17, %v1735_v20  ;;  %v4740_v61 = vadd.f32 %v2292_v23, %v2286_v60 }
 0x35f   : > { %v2041_v46 = vadd.f32 %v2029_v57, %v1987_v25  ;;  %v2071_v31 = vmul.f32 %v4525_v49, %v1737_v13  ;;  %v2107_v8 = vmul.f32 %v4532_v43, %v1737_v13  ;;  %v1740_v37 = vpop.f32.mrb[4].mxu1  ;;  %v4744_v57 = vadd.f32 %v2316_v32, %v4646_v2 }
 0x360   : > { %v2076_v39 = vadd.f32 %v2070_v47, %v2040_v59  ;;  %v2118_v63 = vrot.slane %v2106_v6, 4  ;;  %v1741_v16 = vadd.f32 %v1740_v37, %v4597_v22  ;;  %v1742_v55 = vpop.f32.mrb[5].mxu1  ;;  %5307 = vst [vmem:[#allocation42_spill] sm:$0xff] %v4740_v61  ;;  %v4761_v37 = vpop.permute.xlu1 %1638 }
 0x361   : > { %v2077_v38 = vadd.f32 %v2071_v31, %v2041_v46  ;;  %v2119_v26 = vrot.slane %v2107_v8, 4  ;;  %v1823_v20 = vpop.f32.mrb[12].mxu0  ;;  %v1743_v45 = vadd.f32 %v1742_v55, %v4597_v22  ;;  %5308 = vst [vmem:[#allocation43_spill] sm:$0xff] %v4744_v57  ;;  %v4751_v46 = vadd.f32 %v2333_v50, %v2327_v7 }
 0x362   : > { %v2130_v25 = vadd.f32 %v2118_v63, %v2076_v39  ;;  %v2473_v13 = vmul.f32 %v4491_v0, %v1741_v16  ;;  %v2503_v40 = vmul.f32 %v4506_v21, %v1741_v16  ;;  %v1825_v59 = vpop.f32.mrb[13].mxu0  ;;  %v2467_v23 = vmul.f32 %v4487_v42, %v1741_v16 }
 0x363   : > { %v2131_v34 = vadd.f32 %v2119_v26, %v2077_v38  ;;  %v1824_v60 = vadd.f32 %v1823_v20, %v4657_v3  ;;  %v1746_v47 = vpop.f32.mrb[6].mxu1  ;;  %5309 = vst [vmem:[#allocation44_spill] sm:$0xff] %v4751_v46  ;;  %v2533_v2 = vmul.f32 %v4518_v17, %v1741_v16  ;;  %v2468_v63 = vmul.f32 %v4498_v36, %v1743_v45 }
 0x364   : > { %v2485_v55 = vrot.slane %v2473_v13, 2  ;;  %v2474_v0 = vmul.f32 %v4502_v56, %v1743_v45  ;;  %v1748_v32 = vpop.f32.mrb[7].mxu1  ;;  %v4757_v21 = vmul.f32 %v4521_v51, %v2130_v25  ;;  %v2515_v31 = vrot.slane %v2503_v40, 4 }
 0x365   : > { %v1988_v26 = vmul.f32 %v4544_v4, %v1824_v60  ;;  %v2018_v42 = vmul.f32 %v4561_v24, %v1824_v60  ;;  %v1829_v8 = vpop.f32.mrb[14].mxu0  ;;  %v2504_v17 = vmul.f32 %v4525_v49, %v1743_v45  ;;  %v2534_v36 = vmul.f32 %v4532_v43, %v1743_v45 }
 0x366   : > { %v2497_v7 = vadd.f32 %v2485_v55, %v2467_v23  ;;  %v2486_v50 = vrot.slane %v2474_v0, 2  ;;  %v1831_v39 = vpop.f32.mrb[15].mxu0  ;;  %v1826_v16 = vadd.f32 %v1825_v59, %v4657_v3  ;;  %v4767_v38 = vadd.f32 %v1746_v47, %v4761_v37 }
 0x367   : > { %v2030_v56 = vrot.slane %v2018_v42, 4  ;;  %v1830_v20 = vadd.f32 %v1829_v8, %v4718_v41  ;;  %v1752_v25 = vpop.f32.mrb[8].mxu1  ;;  %v2545_v40 = vrot.slane %v2533_v2, 6  ;;  %v2516_v6 = vrot.slane %v2504_v17, 4 }
 0x368   : > { %v2527_v13 = vadd.f32 %v2515_v31, %v2497_v7  ;;  %v2498_v60 = vadd.f32 %v2486_v50, %v2468_v63  ;;  %v4770_v23 = vpop.f32.mrb[9].mxu1  ;;  %v2546_v49 = vrot.slane %v2534_v36, 6  ;;  %v2019_v43 = vmul.f32 %v4585_v30, %v1826_v16 }
 0x369   : > { %v2042_v55 = vadd.f32 %v2030_v56, %v1988_v26  ;;  %v2596_v45 = vrot.slane %v4767_v38, %v3659_v14  ;;  %v4775_v59 = vpop.f32.mrb[16].mxu0  ;;  %v2626_v42 = vrot.slane %v4767_v38, %v5270_v35  ;;  %v2765_v2 = vrot.slane %v4767_v38, %v3784_v33 }
 0x36a   : > { %v2557_v47 = vadd.f32 %v2545_v40, %v2527_v13  ;;  %v2528_v0 = vadd.f32 %v2516_v6, %v2498_v60  ;;  %v4781_v63 = vpop.f32.mrb[17].mxu0  ;;  %v1989_v31 = vmul.f32 %v4571_v48, %v1826_v16  ;;  %v2031_v26 = vrot.slane %v2019_v43, 4 }
 0x36b   : > { %v2795_v8 = vrot.slane %v4767_v38, %v3650_v10  ;;  %v2072_v7 = vmul.f32 %v4565_v52, %v1830_v20  ;;  %v4787_v50 = vpop.f32.mrb[10].mxu1  ;;  %v4792_v56 = vmul.f32 %v2626_v42, %v4472_v28  ;;  %v4797_v16 = vmul.f32 %v4535_v18, %v2131_v34  ;;  %v4812_v34 = vpop.permute.xlu1 %1643 }
 0x36c   : > { %5310 = vst [vmem:[#allocation45_spill] sm:$0xff] %v4787_v50  ;;  %v2566_v6 = vrot.slane %v2557_v47, %v3659_v14  ;;  %v2735_v17 = vrot.slane %v2557_v47, %v3784_v33  ;;  %v2558_v36 = vadd.f32 %v2546_v49, %v2528_v0  ;;  %v4794_v13 = vpop.f32.mrb[11].mxu1  ;;  %v4800_v40 = vmul.f32 %v2596_v45, %v4472_v28 }
 0x36d   : > { %5311 = vst [vmem:[#allocation46_spill] sm:$0xff] %v4794_v13  ;;  %v2816_v60 = vmul.f32 %v2795_v8, %v4472_v28  ;;  %v2078_v43 = vadd.f32 %v2072_v7, %v2042_v55  ;;  %v4803_v46 = vpop.f32.mrb[18].mxu0  ;;  %v2043_v47 = vadd.f32 %v2031_v26, %v1989_v31  ;;  %v2786_v0 = vmul.f32 %v2765_v2, %v4472_v28 }
 0x36e   : > { %v4806_v61 = vmul.f32 %v2566_v6, %v4459_v5  ;;  %v2570_v49 = vrot.slane %v2558_v36, %v3659_v14  ;;  %v4810_v53 = vpop.f32.mrb[19].mxu0  ;;  %5313 = vst [vmem:[#allocation48_spill] sm:$0xff] %v4812_v34  ;;  %v4815_v45 = vmul.f32 %v2735_v17, %v4459_v5  ;;  %v2739_v55 = vrot.slane %v2558_v36, %v3784_v33 }
 0x36f   : > { %5312 = vst [vmem:[#allocation47_spill] sm:$0xff] %v4810_v53  ;;  %v2108_v7 = vmul.f32 %v4575_v11, %v1830_v20  ;;  %v1749_v6 = vadd.f32 %v1748_v32, %v4761_v37  ;;  %v4820_v57 = vpop.f32.mrb[12].mxu1  ;;  %v2672_v31 = vrot.slane %v4792_v56, 3  ;;  %v2840_v26 = vrot.slane %v2816_v60, 3 }
 0x370   : > { %5314 = vst [vmem:[#allocation49_spill] sm:$0xff] %v4820_v57  ;;  %v1832_v28 = vadd.f32 %v1831_v39, %v4718_v41  ;;  %v1753_v2 = vadd.f32 %v1752_v25, %v4812_v34  ;;  %v4825_v13 = vpop.f32.mrb[13].mxu1  ;;  %v4833_v32 = vmul.f32 %v2570_v49, %v4461_v29  ;;  %v5318_v41 = vrot.slane %v4599_v27, %v5273_v9 }
 0x371   : > { %5315 = vst [vmem:[#allocation50_spill] sm:$0xff] %v4825_v13  ;;  %v2120_v53 = vrot.slane %v2108_v7, 4  ;;  %v2600_v5 = vrot.slane %v1749_v6, %v3659_v14  ;;  %v2630_v17 = vrot.slane %v1749_v6, %v5270_v35  ;;  %v2769_v20 = vrot.slane %v1749_v6, %v3784_v33  ;;  %v4830_v36 = vpop.f32.mrb[20].mxu0 }
 0x372   : > { %5316 = vst [vmem:[#allocation51_spill] sm:$0xff] %v4830_v36  ;;  %v2799_v56 = vrot.slane %v1749_v6, %v3650_v10  ;;  %v2073_v39 = vmul.f32 %v4616_v19, %v1832_v28  ;;  %v2109_v25 = vmul.f32 %v4620_v44, %v1832_v28  ;;  %v4838_v60 = vpop.f32.mrb[21].mxu0  ;;  %v4841_v7 = vmul.f32 %v2739_v55, %v4461_v29 }
 0x373   : > { %5317 = vst [vmem:[#allocation52_spill] sm:$0xff] %v4838_v60  ;;  %v2132_v13 = vadd.f32 %v2120_v53, %v2078_v43  ;;  %v2648_v57 = vmul.f32 %v2630_v17, %v4479_v1  ;;  %v2371_v49 = vmul.f32 %v5318_v41, %v4767_v38  ;;  %v4848_v36 = vpop.f32.mrb[14].mxu1  ;;  %v5320_v28 = vrot.slane %v4601_v62, %v4604_v12 }
 0x374   : > { %5319 = vst [vmem:[#allocation53_spill] sm:$0xff] %v4848_v36  ;;  %v2817_v50 = vmul.f32 %v2799_v56, %v4479_v1  ;;  %v2079_v3 = vadd.f32 %v2073_v39, %v2043_v47  ;;  %v2121_v10 = vrot.slane %v2109_v25, 4  ;;  %v4854_v29 = vpop.f32.mrb[15].mxu1  ;;  %v2618_v53 = vmul.f32 %v2600_v5, %v4479_v1 }
 0x375   : > { %v2401_v60 = vmul.f32 %v5320_v28, %v1753_v2  ;;  %v2787_v43 = vmul.f32 %v2769_v20, %v4479_v1  ;;  %v2653_v55 = vmul.f32 %v2626_v42, %v4494_v58  ;;  %v2822_v27 = vmul.f32 %v2795_v8, %v4494_v58 }
 0x376   : > { %v2675_v41 = vrot.slane %v2648_v57, 3  ;;  %v2133_v38 = vadd.f32 %v2121_v10, %v2079_v3  ;;  %v1836_v47 = vadd.f32 %v4775_v59, %v4597_v22  ;;  %v2843_v39 = vrot.slane %v2817_v50, 3 }
 0x377   : > { %v2413_v36 = vrot.slane %v2401_v60, 4  ;;  %v2673_v25 = vrot.slane %v2653_v55, 3  ;;  %v2841_v62 = vrot.slane %v2822_v27, 3  ;;  %v1755_v2 = vadd.f32 %v4770_v23, %v4812_v34  ;;  %v4864_v28 = vpop.f32.mrb[16].mxu1 }
 0x378   : > { %v2469_v1 = vmul.f32 %v4544_v4, %v1836_v47  ;;  %v2475_v42 = vmul.f32 %v4561_v24, %v1836_v47  ;;  %v5321_v10 = vrot.slane %v4609_v15, %v5273_v9  ;;  %v4871_v3 = vpop.f32.mrb[17].mxu1  ;;  %v2505_v8 = vmul.f32 %v4565_v52, %v1836_v47 }
 0x379   : > { %v2425_v5 = vadd.f32 %v2413_v36, %v2371_v49  ;;  %v2674_v57 = vsel %vm2671_vm12, %v2672_v31, %v2673_v25  ;;  %v2842_v59 = vsel %vm2671_vm12, %v2840_v26, %v2841_v62  ;;  %v2535_v23 = vmul.f32 %v4575_v11, %v1836_v47  ;;  %v5323_v49 = vld [vmem:[#allocation12_spill] sm:$0xff] }
 0x37a   : > { %v2372_v58 = vmul.f32 %v5321_v10, %v1749_v6  ;;  %v2696_v20 = vadd.f32 %v2674_v57, %v4800_v40  ;;  %v2864_v4 = vadd.f32 %v2842_v59, %v2786_v0  ;;  %v2487_v36 = vrot.slane %v2475_v42, 2  ;;  %v5326_v42 = vld [vmem:[#allocation18_spill] sm:$0xff] }
 0x37b   : > { %v2431_v50 = vmul.f32 0.57735026, %v2425_v5  ;;  %v2517_v24 = vrot.slane %v2505_v8, 4  ;;  %v2547_v60 = vrot.slane %v2535_v23, 6  ;;  %v5322_v15 = vrot.slane %v4625_v54, %v4604_v12  ;;  %v4882_v55 = vpop.f32.mrb[18].mxu1 }
 0x37c   : > { %v2654_v31 = vmul.f32 %v2630_v17, %v5323_v49  ;;  %5324 = vst [vmem:[#allocation12_spill] sm:$0xff] %v4882_v55  ;;  %v2702_v52 = vmul.f32 %v2696_v20, %v4521_v51  ;;  %v2870_v11 = vmul.f32 %v2864_v4, %v4521_v51  ;;  %v2499_v27 = vadd.f32 %v2487_v36, %v2469_v1  ;;  %v4886_v40 = vpop.f32.mrb[19].mxu1 }
 0x37d   : > { %v2402_v6 = vmul.f32 %v5322_v15, %v1755_v2  ;;  %v2443_v26 = vrot.slane %v2431_v50, 4  ;;  %5325 = vst [vmem:[#allocation54_spill] sm:$0xff] %v4886_v40  ;;  %v2823_v25 = vmul.f32 %v2799_v56, %v5323_v49  ;;  %v1838_v54 = vadd.f32 %v4781_v63, %v4597_v22 }
 0x37e   : > { %v2676_v47 = vrot.slane %v2654_v31, 3  ;;  %v2714_v17 = vrot.slane %v2702_v52, 4  ;;  %v2882_v2 = vrot.slane %v2870_v11, 4  ;;  %v2529_v5 = vadd.f32 %v2517_v24, %v2499_v27  ;;  %v5328_v11 = vld [vmem:[#allocation9_spill] sm:$0xff] }
 0x37f   : > { %v2414_v0 = vrot.slane %v2402_v6, 4  ;;  %v2455_v62 = vadd.f32 %v2443_v26, %v4757_v21  ;;  %v4893_v10 = vmul.f32 %v5326_v42, %v2132_v13  ;;  %v2844_v1 = vrot.slane %v2823_v25, 3 }
 0x380   : > { %v2677_v51 = vsel %vm2671_vm12, %v2675_v41, %v2676_v47  ;;  %v2726_v59 = vadd.f32 %v2714_v17, %v4806_v61  ;;  %v2894_v8 = vadd.f32 %v2882_v2, %v4815_v45  ;;  %v2559_v56 = vadd.f32 %v2547_v60, %v2529_v5  ;;  %v5327_v60 = vld [vmem:[#allocation20_spill] sm:$0xff]  ;;  %v5329_v17 = vld [vmem:[#allocation10_spill] sm:$0xff] }
 0x381   : > { %v2426_v57 = vadd.f32 %v2414_v0, %v2372_v58  ;;  %v2470_v23 = vmul.f32 %v4571_v48, %v1838_v54  ;;  %v2697_v50 = vadd.f32 %v2677_v51, %v2618_v53  ;;  %v2845_v21 = vsel %vm2671_vm12, %v2843_v39, %v2844_v1  ;;  %v5330_v51 = vld [vmem:[#allocation11_spill] sm:$0xff] }
 0x382   : > { %v2476_v20 = vmul.f32 %v4585_v30, %v1838_v54  ;;  %v2461_v4 = vmul.f32 0.4082483, %v2455_v62  ;;  %v2900_v13 = vmul.f32 0.4082483, %v2726_v59  ;;  %v2906_v58 = vmul.f32 0.4082483, %v2894_v8 }
 0x383   : > { %v2432_v63 = vmul.f32 0.57735026, %v2426_v57  ;;  %v2574_v41 = vrot.slane %v2559_v56, %v3659_v14  ;;  %v2703_v61 = vmul.f32 %v2697_v50, %v4535_v18  ;;  %v2865_v24 = vadd.f32 %v2845_v21, %v2787_v43  ;;  %v5332_v59 = vld [vmem:[#allocation45_spill] sm:$0xff] }
 0x384   : > { %v2488_v45 = vrot.slane %v2476_v20, 2  ;;  %v4904_v15 = vmul.f32 %v5327_v60, %v2133_v38  ;;  %v2918_v48 = vrot.slane %v2900_v13, 4  ;;  %v2936_v53 = vrot.slane %v2906_v58, 1 }
 0x385   : > { %v2444_v36 = vrot.slane %v2432_v63, 4  ;;  %v2743_v39 = vrot.slane %v2559_v56, %v3784_v33  ;;  %v2715_v6 = vrot.slane %v2703_v61, 4  ;;  %v2871_v49 = vmul.f32 %v2865_v24, %v4535_v18  ;;  %v5334_v61 = vld [vmem:[#allocation47_spill] sm:$0xff] }
 0x386   : > { %v2500_v31 = vadd.f32 %v2488_v45, %v2470_v23  ;;  %v2949_v26 = vsel %vm2948_vm13, %v2461_v4, %v2918_v48  ;;  %2967 = vst [vmem:[%s4912_s13 + $0x30] sm:$0x3] %v2936_v53  ;;  %v2506_v43 = vmul.f32 %v4616_v19, %v1838_v54  ;;  %v2536_v38 = vmul.f32 %v4620_v44, %v1838_v54  ;;  %v5333_v4 = vld [vmem:[#allocation26_spill] sm:$0xff]  ;;  %v5335_v48 = vld [vmem:[#allocation24_spill] sm:$0xff] }
 0x387   : > { %v2456_v30 = vadd.f32 %v2444_v36, %v4797_v16  ;;  %v1842_v52 = vadd.f32 %v4803_v46, %v4761_v37  ;;  %v2955_v16 = vsel %vm461_vm0, %v2949_v26, %v2936_v53  ;;  %v4921_v18 = vmul.f32 %v2574_v41, %v5328_v11 }
 0x388   : > { %v2727_v27 = vadd.f32 %v2715_v6, %v4833_v32  ;;  %v2883_v0 = vrot.slane %v2871_v49, 4  ;;  %2961 = vst [vmem:[%s4912_s13] sm:$0xff] %v2955_v16  ;;  %v2518_v25 = vrot.slane %v2506_v43, 4  ;;  %v2548_v57 = vrot.slane %v2536_v38, 6  ;;  %v5331_v32 = vld [vmem:[#allocation28_spill] sm:$0xff] }
 0x389   : > { %v2462_v47 = vmul.f32 0.4082483, %v2456_v30  ;;  %v2604_v62 = vrot.slane %v1842_v52, %v3659_v14  ;;  %v2634_v19 = vrot.slane %v1842_v52, %v5270_v35  ;;  %v2773_v46 = vrot.slane %v1842_v52, %v3784_v33  ;;  %v5336_v30 = vld [vmem:[#allocation46_spill] sm:$0xff]  ;;  %v5337_v38 = vld [vmem:[#allocation8_spill] sm:$0xff] }
 0x38a   : > { %v2895_v44 = vadd.f32 %v2883_v0, %v4841_v7  ;;  %v2901_v54 = vmul.f32 0.4082483, %v2727_v27  ;;  %v2803_v2 = vrot.slane %v1842_v52, %v5329_v17  ;;  %v2530_v5 = vadd.f32 %v2518_v25, %v2500_v31  ;;  %v5338_v25 = vld [vmem:[#allocation14_spill] sm:$0xff] }
 0x38b   : > { %v2649_v1 = vmul.f32 %v2634_v19, %v5330_v51  ;;  %v1919_v8 = vadd.f32 %v5332_v59, %v5331_v32  ;;  %v4934_v56 = vmul.f32 %v2743_v39, %v5328_v11  ;;  %v2619_v21 = vmul.f32 %v2604_v62, %v5330_v51  ;;  %v5342_v59 = vld [vmem:[#allocation22_spill] sm:$0xff] }
 0x38c   : > { %v2907_v23 = vmul.f32 0.4082483, %v2895_v44  ;;  %v2919_v63 = vrot.slane %v2901_v54, 4  ;;  %v2818_v7 = vmul.f32 %v2803_v2, %v5330_v51  ;;  %v4937_v50 = vadd.f32 %v2548_v57, %v2530_v5  ;;  %v5339_v54 = vld [vmem:[#allocation29_spill] sm:$0xff]  ;;  %v5340_v57 = vld [vmem:[#allocation30_spill] sm:$0xff] }
 0x38d   : > { %v2788_v20 = vmul.f32 %v2773_v46, %v5330_v51  ;;  %v2020_v13 = vmul.f32 %v5333_v4, %v1919_v8  ;;  %v2678_v36 = vrot.slane %v2649_v1, 3  ;;  %v1844_v24 = vadd.f32 %v5334_v61, %v4761_v37  ;;  %v5341_v1 = vld [vmem:[#allocation51_spill] sm:$0xff]  ;;  %v5346_v61 = vld [vmem:[#allocation49_spill] sm:$0xff] }
 0x38e   : > { %v2937_v58 = vrot.slane %v2907_v23, 1  ;;  %v2950_v41 = vsel %vm2948_vm13, %v2462_v47, %v2919_v63  ;;  %v2578_v45 = vrot.slane %v4937_v50, %v3659_v14  ;;  %v1990_v53 = vmul.f32 %v5335_v48, %v1919_v8 }
 0x38f   : > { %v2032_v39 = vrot.slane %v2020_v13, 4  ;;  %v1921_v6 = vadd.f32 %v5336_v30, %v5331_v32  ;;  %v2846_v31 = vrot.slane %v2818_v7, 3  ;;  %v2608_v26 = vrot.slane %v1844_v24, %v3659_v14  ;;  %v5344_v7 = vld [vmem:[#allocation13_spill] sm:$0xff]  ;;  %v5347_v30 = vld [vmem:[#allocation23_spill] sm:$0xff] }
 0x390   : > { %v2956_v49 = vsel %vm461_vm0, %v2950_v41, %v2937_v58  ;;  %2968 = vst [vmem:[%s4912_s13 + $0x38] sm:$0x3] %v2937_v58  ;;  %v2638_v43 = vrot.slane %v1844_v24, %v5270_v35  ;;  %v4956_v16 = vmul.f32 %v2578_v45, %v5337_v38  ;;  %v2777_v27 = vrot.slane %v1844_v24, %v3784_v33  ;;  %v5345_v41 = vld [vmem:[#allocation39_spill] sm:$0xff] }
 0x391   : > { %2962 = vst [vmem:[%s4912_s13 + $0x8] sm:$0xff] %v2956_v49  ;;  %v2807_v0 = vrot.slane %v1844_v24, %v5329_v17  ;;  %v2044_v47 = vadd.f32 %v2032_v39, %v1990_v53  ;;  %v2620_v62 = vmul.f32 %v2608_v26, %v5338_v25  ;;  %v1991_v46 = vmul.f32 %v5339_v54, %v1921_v6  ;;  %v5349_v26 = vld [vmem:[#allocation52_spill] sm:$0xff] }
 0x392   : > { %v2650_v44 = vmul.f32 %v2638_v43, %v5338_v25  ;;  %v2021_v51 = vmul.f32 %v5340_v57, %v1921_v6  ;;  %v1848_v32 = vadd.f32 %v5341_v1, %v4812_v34  ;;  %v5343_v8 = vrot.slane %v5342_v59, %v5273_v9 }
 0x393   : > { %v2819_v5 = vmul.f32 %v2807_v0, %v5338_v25  ;;  %v2655_v13 = vmul.f32 %v2634_v19, %v5344_v7  ;;  %v2824_v58 = vmul.f32 %v2803_v2, %v5344_v7  ;;  %v1925_v45 = vadd.f32 %v5346_v61, %v5345_v41  ;;  %v5352_v7 = vld [vmem:[#allocation27_spill] sm:$0xff] }
 0x394   : > { %v2373_v23 = vmul.f32 %v5343_v8, %v1842_v52  ;;  %v2681_v63 = vrot.slane %v2650_v44, 3  ;;  %v2033_v39 = vrot.slane %v2021_v51, 4  ;;  %v5348_v6 = vrot.slane %v5347_v30, %v4604_v12  ;;  %v5350_v52 = vld [vmem:[#allocation33_spill] sm:$0xff]  ;;  %v5351_v8 = vld [vmem:[#allocation34_spill] sm:$0xff]  ;;  %v5354_v51 = vld [vmem:[#allocation31_spill] sm:$0xff] }
 0x395   : > { %v2849_v53 = vrot.slane %v2819_v5, 3  ;;  %v1850_v1 = vadd.f32 %v5349_v26, %v4812_v34  ;;  %v2679_v11 = vrot.slane %v2655_v13, 3  ;;  %v2847_v59 = vrot.slane %v2824_v58, 3 }
 0x396   : > { %v2403_v49 = vmul.f32 %v5348_v6, %v1848_v32  ;;  %v2074_v44 = vmul.f32 %v5350_v52, %v1925_v45  ;;  %v2110_v19 = vmul.f32 %v5351_v8, %v1925_v45  ;;  %v2045_v40 = vadd.f32 %v2033_v39, %v1991_v46  ;;  %v5356_v39 = vld [vmem:[#allocation16_spill] sm:$0xff] }
 0x397   : > { %v5353_v61 = vrot.slane %v5352_v7, %v5273_v9  ;;  %v5355_v55 = vrot.slane %v5354_v51, %v4604_v12  ;;  %v2680_v32 = vsel %vm2671_vm12, %v2678_v36, %v2679_v11  ;;  %v2848_v6 = vsel %vm2671_vm12, %v2846_v31, %v2847_v59  ;;  %v5357_v7 = vld [vmem:[#allocation50_spill] sm:$0xff] }
 0x398   : > { %v2415_v2 = vrot.slane %v2403_v49, 4  ;;  %v2080_v13 = vadd.f32 %v2074_v44, %v2044_v47  ;;  %v2122_v58 = vrot.slane %v2110_v19, 4  ;;  %v2698_v34 = vadd.f32 %v2680_v32, %v2619_v21  ;;  %v5359_v51 = vld [vmem:[#allocation38_spill] sm:$0xff] }
 0x399   : > { %v2374_v5 = vmul.f32 %v5353_v61, %v1844_v24  ;;  %v2404_v30 = vmul.f32 %v5355_v55, %v1850_v1  ;;  %v2866_v17 = vadd.f32 %v2848_v6, %v2788_v20  ;;  %v2656_v49 = vmul.f32 %v2638_v43, %v5356_v39  ;;  %v5360_v6 = vld [vmem:[#allocation53_spill] sm:$0xff] }
 0x39a   : > { %v2427_v26 = vadd.f32 %v2415_v2, %v2373_v23  ;;  %v4991_v46 = vadd.f32 %v2122_v58, %v2080_v13  ;;  %v2825_v24 = vmul.f32 %v2807_v0, %v5356_v39  ;;  %v1927_v61 = vadd.f32 %v5357_v7, %v5345_v41  ;;  %v5358_v23 = vld [vmem:[#allocation36_spill] sm:$0xff] }
 0x39b   : > { %v2416_v45 = vrot.slane %v2404_v30, 4  ;;  %v2704_v36 = vmul.f32 %v2698_v34, %v5326_v42  ;;  %v2872_v31 = vmul.f32 %v2866_v17, %v5326_v42  ;;  %v2789_v47 = vmul.f32 %v2777_v27, %v5338_v25 }
 0x39c   : > { %v2433_v55 = vmul.f32 0.57735026, %v2427_v26  ;;  %v2682_v21 = vrot.slane %v2656_v49, 3  ;;  %v2850_v20 = vrot.slane %v2825_v24, 3  ;;  %v2075_v1 = vmul.f32 %v5358_v23, %v1927_v61 }
 0x39d   : > { %v2428_v11 = vadd.f32 %v2416_v45, %v2374_v5  ;;  %v2716_v44 = vrot.slane %v2704_v36, 4  ;;  %v2884_v43 = vrot.slane %v2872_v31, 4  ;;  %v2111_v34 = vmul.f32 %v5359_v51, %v1927_v61 }
 0x39e   : > { %v2445_v59 = vrot.slane %v2433_v55, 4  ;;  %v2683_v0 = vsel %vm2671_vm12, %v2681_v63, %v2682_v21  ;;  %v2851_v41 = vsel %vm2671_vm12, %v2849_v53, %v2850_v20  ;;  %v2081_v2 = vadd.f32 %v2075_v1, %v2045_v40 }
 0x39f   : > { %v2434_v19 = vmul.f32 0.57735026, %v2428_v11  ;;  %v2728_v17 = vadd.f32 %v2716_v44, %v4921_v18  ;;  %v2896_v27 = vadd.f32 %v2884_v43, %v4934_v56  ;;  %v2699_v5 = vadd.f32 %v2683_v0, %v2620_v62 }
 0x3a0   : > { %v2457_v42 = vadd.f32 %v2445_v59, %v4893_v10  ;;  %v2867_v30 = vadd.f32 %v2851_v41, %v2789_v47  ;;  %v2123_v32 = vrot.slane %v2111_v34, 4  ;;  %v1931_v13 = vadd.f32 %v5360_v6, %v4597_v22  ;;  %v5363_v41 = vld [vmem:[#allocation37_spill] sm:$0xff] }
 0x3a1   : > { %v2446_v25 = vrot.slane %v2434_v19, 4  ;;  %v2902_v63 = vmul.f32 0.4082483, %v2728_v17  ;;  %v2908_v53 = vmul.f32 0.4082483, %v2896_v27  ;;  %v5361_v10 = vrot.slane %v4937_v50, %v3784_v33 }
 0x3a2   : > { %v2463_v58 = vmul.f32 0.4082483, %v2457_v42  ;;  %v2705_v56 = vmul.f32 %v2699_v5, %v5327_v60  ;;  %v2873_v62 = vmul.f32 %v2867_v30, %v5327_v60  ;;  %v5016_v26 = vadd.f32 %v2123_v32, %v2081_v2 }
 0x3a3   : > { %v2458_v40 = vadd.f32 %v2446_v25, %v4904_v15  ;;  %v2759_v18 = vmul.f32 %v5361_v10, %v5337_v38  ;;  %v2920_v45 = vrot.slane %v2902_v63, 4  ;;  %v2938_v39 = vrot.slane %v2908_v53, 1  ;;  %v5367_v53 = vld [vmem:[#allocation41_spill] sm:$0xff]  ;;  %v5368_v10 = vld [vmem:[#allocation42_spill] sm:$0xff] }
 0x3a4   : > { %v2471_v49 = vmul.f32 %v5335_v48, %v1931_v13  ;;  %v2477_v24 = vmul.f32 %v5333_v4, %v1931_v13  ;;  %v2717_v15 = vrot.slane %v2705_v56, 4  ;;  %v2885_v61 = vrot.slane %v2873_v62, 4  ;;  %v5369_v56 = vld [vmem:[#allocation35_spill] sm:$0xff] }
 0x3a5   : > { %v2464_v7 = vmul.f32 0.4082483, %v2458_v40  ;;  %v2507_v55 = vmul.f32 %v5350_v52, %v1931_v13  ;;  %v2951_v50 = vsel %vm2948_vm13, %v2463_v58, %v2920_v45  ;;  %2969 = vst [vmem:[%s4912_s13 + $0x40] sm:$0x3] %v2938_v39  ;;  %v2537_v60 = vmul.f32 %v5351_v8, %v1931_v13  ;;  %v5366_v13 = vld [vmem:[#allocation19_spill] sm:$0xff] }
 0x3a6   : > { %v2489_v38 = vrot.slane %v2477_v24, 2  ;;  %v1933_v36 = vadd.f32 %v4854_v29, %v4597_v22  ;;  %v2957_v31 = vsel %vm461_vm0, %v2951_v50, %v2938_v39  ;;  %v2729_v48 = vadd.f32 %v2717_v15, %v4956_v16  ;;  %v5370_v39 = vld [vmem:[#allocation44_spill] sm:$0xff]  ;;  %v5371_v50 = vld [vmem:[#allocation15_spill] sm:$0xff] }
 0x3a7   : > { %v2897_v11 = vadd.f32 %v2885_v61, %v2759_v18  ;;  %v2519_v4 = vrot.slane %v2507_v55, 4  ;;  %2963 = vst [vmem:[%s4912_s13 + $0x10] sm:$0xff] %v2957_v31  ;;  %v2549_v21 = vrot.slane %v2537_v60, 6  ;;  %v1937_v16 = vadd.f32 %v4864_v28, %v4761_v37  ;;  %v5374_v31 = vld [vmem:[#allocation12_spill] sm:$0xff] }
 0x3a8   : > { %v2501_v47 = vadd.f32 %v2489_v38, %v2471_v49  ;;  %v2472_v52 = vmul.f32 %v5339_v54, %v1933_v36  ;;  %v2478_v20 = vmul.f32 %v5340_v57, %v1933_v36  ;;  %v2903_v1 = vmul.f32 0.4082483, %v2729_v48  ;;  %v5362_v57 = vld [vmem:[#allocation43_spill] sm:$0xff]  ;;  %v5372_v38 = vld [vmem:[#allocation21_spill] sm:$0xff] }
 0x3a9   : > { %v2909_v59 = vmul.f32 0.4082483, %v2897_v11  ;;  %v2508_v8 = vmul.f32 %v5358_v23, %v1933_v36  ;;  %v2538_v22 = vmul.f32 %v5359_v51, %v1933_v36  ;;  %v1939_v43 = vadd.f32 %v4871_v3, %v4761_v37  ;;  %v5365_v3 = vld [vmem:[#allocation10_spill] sm:$0xff]  ;;  %v5373_v36 = vld [vmem:[#allocation48_spill] sm:$0xff] }
 0x3aa   : > { %v2531_v29 = vadd.f32 %v2519_v4, %v2501_v47  ;;  %v2490_v44 = vrot.slane %v2478_v20, 2  ;;  %v2921_v19 = vrot.slane %v2903_v1, 4  ;;  %v5364_v2 = vrot.slane %v5363_v41, 2  ;;  %v5375_v47 = vld [vmem:[#allocation25_spill] sm:$0xff] }
 0x3ab   : > { %v2939_v0 = vrot.slane %v2909_v59, 1  ;;  %v2520_v54 = vrot.slane %v2508_v8, 4  ;;  %v2550_v51 = vrot.slane %v2538_v22, 6  ;;  %v2642_v17 = vrot.slane %v1937_v16, %v5270_v35 }
 0x3ac   : > { %v2346_v34 = vadd.f32 %v5364_v2, %v5362_v57  ;;  %v5040_v42 = vadd.f32 %v2549_v21, %v2531_v29  ;;  %v2502_v23 = vadd.f32 %v2490_v44, %v2472_v52  ;;  %v2952_v27 = vsel %vm2948_vm13, %v2464_v7, %v2921_v19  ;;  %v5376_v29 = vld [vmem:[#allocation54_spill] sm:$0xff]  ;;  %v5377_v57 = vld [vmem:[#allocation32_spill] sm:$0xff] }
 0x3ad   : > { %2970 = vst [vmem:[%s4912_s13 + $0x48] sm:$0x3] %v2939_v0  ;;  %v2612_v28 = vrot.slane %v1937_v16, %v3659_v14  ;;  %v2781_v37 = vrot.slane %v1937_v16, %v3784_v33  ;;  %v2811_v25 = vrot.slane %v1937_v16, %v5365_v3  ;;  %v2958_v5 = vsel %vm461_vm0, %v2952_v27, %v2939_v0 }
 0x3ae   : > { %v2582_v30 = vrot.slane %v5040_v42, %v3659_v14  ;;  %v2532_v32 = vadd.f32 %v2520_v54, %v2502_v23  ;;  %v2616_v6 = vrot.slane %v1939_v43, %v3659_v14  ;;  %2964 = vst [vmem:[%s4912_s13 + $0x18] sm:$0xff] %v2958_v5  ;;  %v2651_v58 = vmul.f32 %v2642_v17, %v5366_v13 }
 0x3af   : > { %v2820_v63 = vmul.f32 %v2811_v25, %v5366_v13  ;;  %v2366_v40 = vrot.slane %v5367_v53, %v5273_v9  ;;  %v2370_v18 = vrot.slane %v5368_v10, %v5273_v9  ;;  %v2197_v62 = vmul.f32 %v5369_v56, %v4991_v46 }
 0x3b0   : > { %v2562_v45 = vadd.f32 %v2550_v51, %v2532_v32  ;;  %v2396_v49 = vrot.slane %v5370_v39, %v4604_v12  ;;  %v2400_v24 = vrot.slane %v2346_v34, %v4604_v12  ;;  %v2751_v7 = vrot.slane %v5040_v42, %v3784_v33 }
 0x3b1   : > { %v2621_v15 = vmul.f32 %v2612_v28, %v5366_v13  ;;  %v2790_v61 = vmul.f32 %v2781_v37, %v5366_v13  ;;  %v2646_v55 = vrot.slane %v1939_v43, %v5270_v35  ;;  %v2591_v9 = vmul.f32 %v2582_v30, %v5371_v50 }
 0x3b2   : > { %v2622_v60 = vmul.f32 %v2616_v6, %v5372_v38  ;;  %v2815_v46 = vrot.slane %v1939_v43, %v5365_v3  ;;  %v1943_v48 = vadd.f32 %v5374_v31, %v5373_v36  ;;  %v2684_v11 = vrot.slane %v2651_v58, 3 }
 0x3b3   : > { %v2852_v12 = vrot.slane %v2820_v63, 3  ;;  %v2652_v4 = vmul.f32 %v2646_v55, %v5372_v38  ;;  %v2657_v21 = vmul.f32 %v2642_v17, %v5375_v47  ;;  %v2586_v52 = vrot.slane %v2562_v45, %v3659_v14 }
 0x3b4   : > { %v2785_v20 = vrot.slane %v1939_v43, %v3784_v33  ;;  %v2821_v35 = vmul.f32 %v2815_v46, %v5372_v38  ;;  %v2405_v1 = vmul.f32 %v2396_v49, %v1943_v48  ;;  %v2375_v59 = vmul.f32 %v2366_v40, %v1937_v16 }
 0x3b5   : > { %v2685_v8 = vrot.slane %v2657_v21, 3  ;;  %v2826_v22 = vmul.f32 %v2811_v25, %v5375_v47  ;;  %v1945_v44 = vadd.f32 %v5376_v29, %v5373_v36  ;;  %v2687_v19 = vrot.slane %v2652_v4, 3 }
 0x3b6   : > { %v2855_v0 = vrot.slane %v2821_v35, 3  ;;  %v2417_v54 = vrot.slane %v2405_v1, 4  ;;  %v2658_v41 = vmul.f32 %v2646_v55, %v5377_v57  ;;  %v2827_v42 = vmul.f32 %v2815_v46, %v5377_v57 }
 0x3b7   : > { %v2686_v2 = vsel %vm2671_vm12, %v2684_v11, %v2685_v8  ;;  %v2853_v14 = vrot.slane %v2826_v22, 3  ;;  %v2406_v34 = vmul.f32 %v2400_v24, %v1945_v44  ;;  %v2791_v23 = vmul.f32 %v2785_v20, %v5372_v38  ;;  %v5379_v38 = vld [vmem:[#allocation17_spill] sm:$0xff] }
 0x3b8   : > { %v2429_v16 = vadd.f32 %v2417_v54, %v2375_v59  ;;  %v2700_v51 = vadd.f32 %v2686_v2, %v2621_v15  ;;  %v2688_v17 = vrot.slane %v2658_v41, 3  ;;  %v2376_v28 = vmul.f32 %v2370_v18, %v1939_v43  ;;  %v5378_v43 = vld [vmem:[#allocation40_spill] sm:$0xff] }
 0x3b9   : > { %v2854_v27 = vsel %vm2671_vm12, %v2852_v12, %v2853_v14  ;;  %v2418_v37 = vrot.slane %v2406_v34, 4  ;;  %v2856_v3 = vrot.slane %v2827_v42, 3  ;;  %v2755_v6 = vrot.slane %v2562_v45, %v3784_v33 }
 0x3ba   : > { %v2435_v25 = vmul.f32 0.57735026, %v2429_v16  ;;  %v2706_v5 = vmul.f32 %v2700_v51, %v5369_v56  ;;  %v2868_v30 = vadd.f32 %v2854_v27, %v2790_v61  ;;  %v2689_v32 = vsel %vm2671_vm12, %v2687_v19, %v2688_v17 }
 0x3bb   : > { %v2430_v13 = vadd.f32 %v2418_v37, %v2376_v28  ;;  %v2701_v58 = vadd.f32 %v2689_v32, %v2622_v60  ;;  %v2857_v63 = vsel %vm2671_vm12, %v2855_v0, %v2856_v3  ;;  %v2198_v18 = vmul.f32 %v5378_v43, %v5016_v26 }
 0x3bc   : > { %v2447_v53 = vrot.slane %v2435_v25, 4  ;;  %v2718_v40 = vrot.slane %v2706_v5, 4  ;;  %v2874_v10 = vmul.f32 %v2868_v30, %v5369_v56  ;;  %v2869_v39 = vadd.f32 %v2857_v63, %v2791_v23 }
 0x3bd   : > { %v2760_v49 = vmul.f32 %v2751_v7, %v5371_v50  ;;  %v2436_v24 = vmul.f32 0.57735026, %v2430_v13  ;;  %v2707_v15 = vmul.f32 %v2701_v58, %v5378_v43  ;;  %v2592_v60 = vmul.f32 %v2586_v52, %v5379_v38 }
 0x3be   : > { %v2459_v61 = vadd.f32 %v2447_v53, %v2197_v62  ;;  %v2730_v55 = vadd.f32 %v2718_v40, %v2591_v9  ;;  %v2886_v33 = vrot.slane %v2874_v10, 4  ;;  %v2875_v45 = vmul.f32 %v2869_v39, %v5378_v43 }
 0x3bf   : > { %v2761_v56 = vmul.f32 %v2755_v6, %v5379_v38  ;;  %v2448_v46 = vrot.slane %v2436_v24, 4  ;;  %v2719_v36 = vrot.slane %v2707_v15, 4 }
 0x3c0   : > { %v2465_v31 = vmul.f32 0.4082483, %v2459_v61  ;;  %v2898_v26 = vadd.f32 %v2886_v33, %v2760_v49  ;;  %v2904_v48 = vmul.f32 0.4082483, %v2730_v55  ;;  %v2887_v7 = vrot.slane %v2875_v45, 4 }
 0x3c1   : > { %v2460_v50 = vadd.f32 %v2448_v46, %v2198_v18  ;;  %v2731_v11 = vadd.f32 %v2719_v36, %v2592_v60 }
 0x3c2   : > { %v2910_v62 = vmul.f32 0.4082483, %v2898_v26  ;;  %v2922_v9 = vrot.slane %v2904_v48, 4  ;;  %v2899_v12 = vadd.f32 %v2887_v7, %v2761_v56 }
 0x3c3   : > { %v2466_v4 = vmul.f32 0.4082483, %v2460_v50  ;;  %v2905_v47 = vmul.f32 0.4082483, %v2731_v11 }
 0x3c4   : > { %v2940_v21 = vrot.slane %v2910_v62, 1  ;;  %v2953_v52 = vsel %vm2948_vm13, %v2465_v31, %v2922_v9  ;;  %v2911_v20 = vmul.f32 0.4082483, %v2899_v12 }
 0x3c5   : > { %v2923_v35 = vrot.slane %v2905_v47, 4 }
 0x3c6   : > { %v2959_v1 = vsel %vm461_vm0, %v2953_v52, %v2940_v21  ;;  %2971 = vst [vmem:[%s4912_s13 + $0x50] sm:$0x3] %v2940_v21  ;;  %v2941_v59 = vrot.slane %v2911_v20, 1 }
 0x3c7   : > { %2965 = vst [vmem:[%s4912_s13 + $0x20] sm:$0xff] %v2959_v1  ;;  %v2954_v8 = vsel %vm2948_vm13, %v2466_v4, %v2923_v35 }
 0x3c8   : > { %v2960_v22 = vsel %vm461_vm0, %v2954_v8, %v2941_v59  ;;  %2972 = vst [vmem:[%s4912_s13 + $0x58] sm:$0x3] %v2941_v59 }
 0x3c9   : > { %2966 = vst [vmem:[%s4912_s13 + $0x28] sm:$0xff] %v2960_v22 }
 0x3ca   : > { %3394 = shalt.err (!%p3391_p4)
}
 0x3cb   : > { %s3395_s24 = scalar_lea.hbm %s5107_s9, 1536  ;;  %s3399_s18 = scalar_lea.hbm %s5165_s8, 6144 }
 0x3cc   : > { %p3396_p5 = scmp.ne.s32.totalorder %s5107_s9, %s3395_s24  ;;  %p3400_p1 = scmp.lt.u32.totalorder %s5107_s9, %s5165_s8 }
 0x3cd   : > { %p3401_p3 = scmp.lt.u32.totalorder %s3399_s18, %s3395_s24  ;;  %p3403_p10 = scmp.lt.u32.totalorder %s3395_s24, %s5107_s9 }
 0x3ce   : > { %p3397_p7 = pnand %p3396_p5, %p5380_p11 }
 0x3cf   : > { %p3402_p6 = por %p3401_p3, %p3400_p1 }
 0x3d0   : > { %p3398_p13 = pneg %p3397_p7 }
 0x3d1   : > { %p3404_p12 = por %p3403_p10, %p3402_p6 }
 0x3d3   : > { %p3405_p8 = pnand %p3404_p12, %p3398_p13 }
 0x3d5   : > { %3408 = shalt.err (!%p3405_p8)
}
 0x3d6   : > { %s3463_s15 = smov 768   ;;  %s3464_s21 = smov 3072  }
 0x3d7   : > { %s3465_s22 = smov 48  }
 0x3d8   : > { %3213 = dma.vmem_to_hbm [thread:$0]  (%p5380_p11), %s5109_s23, 1536, %s5107_s9, %s2974_s12, %s3463_s15, %s3464_s21, %s3465_s22  }
 0x3d9 PF: > { %p3224_p9 = scmp.ge.s32.totalorder %s3447_s30, 2  ;;  %s3002_s25 = sand.u32 1, %s3435_s27  }
 0x3da   : > { %p5381_p0 = scmp.ne.s32.totalorder %s5240_s17, 0  ;;  %s3003_s24 = scalar_lea.sflag [#allocation4], %s3002_s25 }
 0x3dc   : > { %p3220_p2 = pnand %p3224_p9, %p5381_p0 }
 0x3de   : > { %3430 = dma.done.wait (!%p3220_p2), %s3003_s24, 1536  }
 0x3df   : > { %3432 = vsyncadd (!%p3220_p2), %s3003_s24, 4294965760  ;;  %p21_p4 = scmp.ge.s32.totalorder %s3536_s11, 6   ;;  %s5382_s27 = smov %s3439_s28 }
 0x3e0   : > { %s5383_s28 = smov %s3443_s29  ;;  %s5384_s29 = smov %s3548_s14 }
 0x3e1   : > { %s5385_s30 = smov %s3536_s11  ;;  %23 = sbr.rel (!%p21_p4) target bundleno = 5 (0x5), region = 103 }
 0x3e8   :  { %3008 = vsyncpa [#allocation3], 1 }
 0x3e9   :  { %3010 = vsyncpa [#allocation3 + $0x1], 1 }
 0x3ea   :  { %3011 = vsyncpa [#allocation4], 1 }
 0x3eb   :  { %3013 = vsyncpa [#allocation4 + $0x1], 1 }

</bundles_post_ra>
